<compile_context>
chip_gen: v5e
topology: v5e:2x2
jax: 0.10.0
libtpu: 0.0.40
codegen_flags: <defaults>
</compile_context>

<pallas_src>
import functools

import numpy as np
import jax
import jax.numpy as jnp
from jax import lax
from jax.experimental import pallas as pl
from jax.experimental.pallas import tpu as pltpu


def _round_up(x, m):
    return ((x + m - 1) // m) * m


def _default_vmem_limit_bytes():
    """Generation-aware VMEM scratch limit (v5e/v6e: ~96 MiB, v7x: ~48 MiB)."""
    cap = None
    try:
        cap = int(pltpu.get_tpu_info().vmem_capacity_bytes)
    except Exception:
        cap = None
    if not cap or cap <= 0:
        cap = 64 * 1024 * 1024  # conservative (v7x-sized) fallback
    # Leave ~1/4 headroom for Mosaic-internal scratch; cap big-VMEM parts.
    return max(32 * 1024 * 1024, min(cap - cap // 4, 112 * 1024 * 1024))


def _lstm_cell(gates, c, Hp):
    """Gate activations + state update.  Gate blocks are lane-aligned (Hp=128k)."""
    i_g = jax.nn.sigmoid(gates[:, 0 * Hp:1 * Hp])
    f_g = jax.nn.sigmoid(gates[:, 1 * Hp:2 * Hp])
    g_g = jnp.tanh(gates[:, 2 * Hp:3 * Hp])
    o_g = jax.nn.sigmoid(gates[:, 3 * Hp:4 * Hp])
    c_new = f_g * c + i_g * g_g
    h_new = o_g * jnp.tanh(c_new)
    return h_new, c_new


def lstm_fc_kernel(x_ref, wih_ref, whh_ref, b_ref, wfc_ref, bfc_ref,
                   out_ref, h_sc, c_sc, gx_sc,
                   *, seq_len, n_split, mask_time):
    # x_ref:   (Tc, Bb, I)     f32 time-major input chunk
    # wih_ref: (I, 4Hp)        matmul-dtype input->gate weights (Hp gate blocks)
    # whh_ref: (Hp, 4Hp)       matmul-dtype hidden->gate weights
    # b_ref:   (1, 4Hp)        f32 combined bias (b_ih + b_hh), gate-block padded
    # wfc_ref: (Hp, O)         matmul-dtype final linear weight
    # bfc_ref: (1, O)          f32 final linear bias
    # out_ref: (Bb, O)         f32, written on the last time chunk
    # h_sc, c_sc: (Bb, Hp)     f32 state, persists across time-chunk grid steps
    # gx_sc:   (Tc, Bb, 4Hp)   matmul-dtype precomputed input projection
    t_blk = pl.program_id(1)
    Tc, Bb, I = x_ref.shape
    Hp = h_sc.shape[1]
    mdt = whh_ref.dtype          # matmul operand dtype (bf16 fast path or f32)
    rows = Bb // n_split

    @pl.when(t_blk == 0)
    def _():
        h_sc[...] = jnp.zeros_like(h_sc)
        c_sc[...] = jnp.zeros_like(c_sc)

    # Hoisted input projection: one big matmul (M = Tc*Bb) with bias folded in
    # once, instead of Tc tiny matmuls + Tc bias broadcasts inside the loop.
    # Bb % 8 == 0, so merging (Tc, Bb) keeps (8,128) tiles intact (no relayout).
    # Stored in the matmul dtype to halve the dominant VMEM term (v7x 64 MiB).
    x_flat = x_ref[...].reshape(Tc * Bb, I).astype(mdt)
    gx = jnp.dot(x_flat, wih_ref[...], preferred_element_type=jnp.float32)
    gx_sc[...] = (gx + b_ref[...]).reshape(Tc, Bb, 4 * Hp).astype(gx_sc.dtype)
    # TODO(synk): precompute the NEXT chunk's gx (2-slot gx scratch + shifted x
    # index_map) so the projection overlaps the previous chunk's recurrence
    # instead of serializing in front of it.

    t0 = t_blk * Tc

    def step(t, carry):
        # Only the h-dependent matmul remains on the serial critical path.
        # TODO(synk): keep Whh resident in the MXU across timesteps via
        # pltpu.matmul_push_rhs / matmul_acc_lhs / matmul_pop instead of
        # re-feeding it through jnp.dot every step.
        whh = whh_ref[...]
        gx_t = gx_sc[t]
        new_h, new_c = [], []
        for s in range(n_split):   # static split: independent latency chains
            lo, hi = s * rows, (s + 1) * rows
            h = h_sc[lo:hi, :]
            c = c_sc[lo:hi, :]
            gates = (gx_t[lo:hi, :].astype(jnp.float32)
                     + jnp.dot(h.astype(mdt), whh,
                               preferred_element_type=jnp.float32))
            h_n, c_n = _lstm_cell(gates, c, Hp)
            new_h.append(h_n)
            new_c.append(c_n)

        def commit():
            for s in range(n_split):
                lo, hi = s * rows, (s + 1) * rows
                h_sc[lo:hi, :] = new_h[s]
                c_sc[lo:hi, :] = new_c[s]

        if mask_time:
            # Padded timesteps (global index >= seq_len) leave the state alone.
            pl.when(t0 + t < seq_len)(commit)
        else:
            commit()
        return carry

    # Bounded unroll: large chunks + heavy unroll can spill past the 64 vregs.
    lax.fori_loop(0, Tc, step, 0, unroll=min(Tc, 8))

    @pl.when(t_blk == pl.num_programs(1) - 1)
    def _():
        out_ref[...] = (jnp.dot(h_sc[...].astype(mdt), wfc_ref[...],
                                preferred_element_type=jnp.float32)
                        + bfc_ref[...]).astype(out_ref.dtype)


def rnn_forward(x, params, *, matmul_dtype=jnp.bfloat16, t_chunk=32,
                b_block=None, vmem_limit_bytes=None):
    """x: (B, T, I) float32 (batch_first, like the PyTorch module)."""
    w_ih, w_hh, b_ih, b_hh, w_fc, b_fc = params
    B, T, I = x.shape
    H = w_hh.shape[1]
    O = w_fc.shape[0]
    f32 = jnp.float32
    gx_dtype = jnp.dtype(matmul_dtype)   # gx scratch stored in matmul dtype

    Hp = _round_up(H, 128)               # lane-aligned per-gate block
    Bp0 = _round_up(max(B, 8), 8)        # sublane-aligned batch
    if b_block is None:
        # Whole (padded) batch per block, up to 128 rows.  On v7x (2 TC/chip)
        # pass b_block ~= Bp/2 so the "parallel" batch axis spans both cores.
        b_block = min(Bp0, 128)
    b_block = _round_up(min(int(b_block), Bp0), 8)
    Bp = _round_up(Bp0, b_block)         # pad batch UP instead of silently
    nb = Bp // b_block                   # rewriting b_block

    if vmem_limit_bytes is None:
        vmem_limit_bytes = _default_vmem_limit_bytes()
    vmem_limit_bytes = int(vmem_limit_bytes)

    # Clamp the time chunk to the sequence and auto-shrink it to the VMEM budget.
    t_chunk = max(1, min(int(t_chunk), _round_up(T, 8)))
    mm_isize = jnp.dtype(matmul_dtype).itemsize
    gx_isize = gx_dtype.itemsize

    def footprint(tc):
        gx = tc * b_block * 4 * Hp * gx_isize                 # gx scratch
        state = 2 * b_block * Hp * 4                          # h, c
        xbuf = 2 * tc * b_block * I * 4                       # x double buffer
        wbuf = (2 * ((I + Hp) * 4 * Hp + Hp * O) * mm_isize   # weights (2 bufs)
                + 2 * (4 * Hp + O) * 4)                       # biases
        obuf = 2 * b_block * O * 4
        return gx + state + xbuf + wbuf + obuf

    while footprint(t_chunk) > int(0.8 * vmem_limit_bytes) and t_chunk > 8:
        t_chunk = max(8, t_chunk // 2)

    Tp = _round_up(T, t_chunk)
    nt = Tp // t_chunk
    mask_time = (Tp != T)
    # Split the recurrence into two independent sub-blocks when it stays
    # 8-sublane aligned (latency hiding inside the serial loop).
    n_split = 2 if (b_block >= 16 and b_block % 16 == 0) else 1

    # Time-major input, batch/time padded with zero rows (masked / dropped).
    x_tm = jnp.transpose(x, (1, 0, 2)).astype(f32)
    x_p = jnp.zeros((Tp, Bp, I), f32).at[:T, :B, :].set(x_tm)

    # Per-gate lane-aligned weight layout: gate g occupies cols [g*Hp, g*Hp+H);
    # padded hidden channels get zero weights & bias so they stay exactly 0.
    wih4 = jnp.pad(w_ih.reshape(4, H, I), ((0, 0), (0, Hp - H), (0, 0)))
    wih_t = jnp.transpose(wih4, (2, 0, 1)).reshape(I, 4 * Hp).astype(matmul_dtype)
    whh4 = jnp.pad(w_hh.reshape(4, H, H), ((0, 0), (0, Hp - H), (0, Hp - H)))
    whh_t = jnp.transpose(whh4, (2, 0, 1)).reshape(Hp, 4 * Hp).astype(matmul_dtype)
    bias = jnp.pad((b_ih + b_hh).reshape(4, H),
                   ((0, 0), (0, Hp - H))).reshape(1, 4 * Hp).astype(f32)
    wfc_t = jnp.pad(w_fc.T, ((0, Hp - H), (0, 0))).astype(matmul_dtype)  # (Hp, O)
    bfc = b_fc.reshape(1, O).astype(f32)

    kernel = functools.partial(lstm_fc_kernel, seq_len=T, n_split=n_split,
                               mask_time=mask_time)

    # TODO(synk): single-buffer the constant-index weight blocks (e.g. via
    # pipeline_mode=pl.Buffered(1)) to reclaim their second VMEM buffer.
    grid_spec = pltpu.PrefetchScalarGridSpec(
        num_scalar_prefetch=0,
        grid=(nb, nt),
        in_specs=[
            pl.BlockSpec((t_chunk, b_block, I), lambda b, t: (t, b, 0)),
            pl.BlockSpec((I, 4 * Hp), lambda b, t: (0, 0)),
            pl.BlockSpec((Hp, 4 * Hp), lambda b, t: (0, 0)),
            pl.BlockSpec((1, 4 * Hp), lambda b, t: (0, 0)),
            pl.BlockSpec((Hp, O), lambda b, t: (0, 0)),
            pl.BlockSpec((1, O), lambda b, t: (0, 0)),
        ],
        out_specs=pl.BlockSpec((b_block, O), lambda b, t: (b, 0)),
        scratch_shapes=[
            pltpu.VMEM((b_block, Hp), f32),                 # h state
            pltpu.VMEM((b_block, Hp), f32),                 # c state
            pltpu.VMEM((t_chunk, b_block, 4 * Hp), gx_dtype),  # x-gate projection
        ],
    )
    out = pl.pallas_call(
        kernel,
        out_shape=jax.ShapeDtypeStruct((Bp, O), f32),
        grid_spec=grid_spec,
        compiler_params=pltpu.CompilerParams(
            dimension_semantics=("parallel", "arbitrary"),
            vmem_limit_bytes=vmem_limit_bytes),
    )(x_p, wih_t, whh_t, bias, wfc_t, bfc)
    return out[:B]


def init_params(key, input_size, hidden_size, output_size):
    """Deterministic init mirroring torch.nn.LSTM / nn.Linear shapes."""
    k = 1.0 / np.sqrt(hidden_size)
    ks = jax.random.split(key, 6)
    w_ih = jax.random.uniform(ks[0], (4 * hidden_size, input_size),
                              minval=-k, maxval=k, dtype=jnp.float32)
    w_hh = jax.random.uniform(ks[1], (4 * hidden_size, hidden_size),
                              minval=-k, maxval=k, dtype=jnp.float32)
    b_ih = jax.random.uniform(ks[2], (4 * hidden_size,),
                              minval=-k, maxval=k, dtype=jnp.float32)
    b_hh = jax.random.uniform(ks[3], (4 * hidden_size,),
                              minval=-k, maxval=k, dtype=jnp.float32)
    w_fc = jax.random.uniform(ks[4], (output_size, hidden_size),
                              minval=-k, maxval=k, dtype=jnp.float32)
    b_fc = jax.random.uniform(ks[5], (output_size,),
                              minval=-k, maxval=k, dtype=jnp.float32)
    return (w_ih, w_hh, b_ih, b_hh, w_fc, b_fc)


def rnn_reference(x, params):
    """Pure-JAX reference (same math as torch LSTM + Linear on last step)."""
    w_ih, w_hh, b_ih, b_hh, w_fc, b_fc = params
    B = x.shape[0]
    H = w_hh.shape[1]
    h0 = jnp.zeros((B, H), jnp.float32)
    c0 = jnp.zeros((B, H), jnp.float32)

    def step(carry, x_t):
        h, c = carry
        gates = x_t @ w_ih.T + b_ih + h @ w_hh.T + b_hh
        i = jax.nn.sigmoid(gates[:, 0 * H:1 * H])
        f = jax.nn.sigmoid(gates[:, 1 * H:2 * H])
        g = jnp.tanh(gates[:, 2 * H:3 * H])
        o = jax.nn.sigmoid(gates[:, 3 * H:4 * H])
        c = f * c + i * g
        h = o * jnp.tanh(c)
        return (h, c), None

    (h, _), _ = lax.scan(step, (h0, c0), jnp.transpose(x, (1, 0, 2)))
    return h @ w_fc.T + b_fc


if __name__ == "__main__":
    I, H, O = 16, 32, 8
    key = jax.random.PRNGKey(0)
    k1, k2, k3, k4 = jax.random.split(key, 4)

    # Case 1 & 2: module-default shapes (batch=2, seq=6).
    B, T = 2, 6
    x = jax.random.normal(k1, (B, T, I), dtype=jnp.float32)
    params = init_params(k2, I, H, O)
    ref = jax.block_until_ready(rnn_reference(x, params))

    # Exact-semantics check with f32 matmul operands (exercises the masked
    # padded-timestep path: T=6 padded to an 8-step chunk).
    out_f32 = jax.block_until_ready(
        rnn_forward(x, params, matmul_dtype=jnp.float32))
    assert out_f32.shape == (B, O)
    np.testing.assert_allclose(np.asarray(out_f32), np.asarray(ref),
                               rtol=1e-4, atol=1e-4)

    # Default fast path: bf16 matmul operands + bf16 gx scratch, f32 state.
    out_bf16 = jax.block_until_ready(rnn_forward(x, params))
    assert out_bf16.shape == (B, O)
    np.testing.assert_allclose(np.asarray(out_bf16), np.asarray(ref),
                               rtol=5e-2, atol=5e-2)

    # Case 3: multi-chunk streaming (nt=3), masked last chunk, and the
    # split-batch (two 8-row sub-blocks) recurrence path.
    B2, T2 = 16, 20
    x2 = jax.random.normal(k3, (B2, T2, I), dtype=jnp.float32)
    params2 = init_params(k4, I, H, O)
    ref2 = jax.block_until_ready(rnn_reference(x2, params2))
    out2 = jax.block_until_ready(
        rnn_forward(x2, params2, matmul_dtype=jnp.float32, t_chunk=8))
    assert out2.shape == (B2, O)
    np.testing.assert_allclose(np.asarray(out2), np.asarray(ref2),
                               rtol=1e-3, atol=1e-3)

    print("KERNEL_OK")
</pallas_src>

<mosaic_0001>
module attributes {stable_mosaic.version = 11 : i64} {
  func.func @lstm_fc_kernel(%arg0: i32, %arg1: i32, %arg2: memref<8x8x16xf32, #tpu.memory_space<vmem>>, %arg3: memref<16x512xf32, #tpu.memory_space<vmem>>, %arg4: memref<128x512xf32, #tpu.memory_space<vmem>>, %arg5: memref<1x512xf32, #tpu.memory_space<vmem>>, %arg6: memref<128x8xf32, #tpu.memory_space<vmem>>, %arg7: memref<1x8xf32, #tpu.memory_space<vmem>>, %arg8: memref<8x8xf32, #tpu.memory_space<vmem>>, %arg9: memref<8x128xf32, #tpu.memory_space<vmem>>, %arg10: memref<8x128xf32, #tpu.memory_space<vmem>>, %arg11: memref<8x8x512xf32, #tpu.memory_space<vmem>>) attributes {dimension_semantics = [#tpu.dimension_semantics<parallel>, #tpu.dimension_semantics<arbitrary>], iteration_bounds = array<i64: 1, 1>, scalar_prefetch = 0 : i64, scratch_operands = 3 : i64, tpu.core_type = #tpu.core_type<tc>, window_params = [{transform_indices = @transform_0, window_bounds = array<i64: 8, 8, 16>}, {pipeline_mode = #tpu.pipeline_mode<synchronous>, transform_indices = @transform_1, window_bounds = array<i64: 16, 512>}, {pipeline_mode = #tpu.pipeline_mode<synchronous>, transform_indices = @transform_2, window_bounds = array<i64: 128, 512>}, {pipeline_mode = #tpu.pipeline_mode<synchronous>, transform_indices = @transform_3, window_bounds = array<i64: 1, 512>}, {pipeline_mode = #tpu.pipeline_mode<synchronous>, transform_indices = @transform_4, window_bounds = array<i64: 128, 8>}, {pipeline_mode = #tpu.pipeline_mode<synchronous>, transform_indices = @transform_5, window_bounds = array<i64: 1, 8>}, {transform_indices = @transform_6, window_bounds = array<i64: 8, 8>}]} {
    %c0_i32 = arith.constant 0 : i32
    %0 = arith.cmpi eq, %arg1, %c0_i32 : i32
    %1 = arith.extui %0 : i1 to i32
    %c0_i32_0 = arith.constant 0 : i32
    %2 = arith.cmpi ne, %1, %c0_i32_0 : i32
    scf.if %2 {
      %cst_126 = arith.constant 0.000000e+00 : f32
      %312 = vector.broadcast %cst_126 : f32 to vector<8x128xf32>
      %c0_127 = arith.constant 0 : index
      %c0_128 = arith.constant 0 : index
      %313 = vector.load %arg9[%c0_127, %c0_128] : memref<8x128xf32, #tpu.memory_space<vmem>>, vector<8x128xf32>
      tpu.vector_store %arg9[%c0_127, %c0_128], %312 {strides = array<i32>} : memref<8x128xf32, #tpu.memory_space<vmem>>, vector<8x128xf32>,
      %cst_129 = arith.constant 0.000000e+00 : f32
      %314 = vector.broadcast %cst_129 : f32 to vector<8x128xf32>
      %c0_130 = arith.constant 0 : index
      %c0_131 = arith.constant 0 : index
      %315 = vector.load %arg10[%c0_130, %c0_131] : memref<8x128xf32, #tpu.memory_space<vmem>>, vector<8x128xf32>
      tpu.vector_store %arg10[%c0_130, %c0_131], %314 {strides = array<i32>} : memref<8x128xf32, #tpu.memory_space<vmem>>, vector<8x128xf32>,
    } else {
    }
    %c0 = arith.constant 0 : index
    %c0_1 = arith.constant 0 : index
    %c0_2 = arith.constant 0 : index
    %3 = vector.load %arg2[%c0, %c0_1, %c0_2] : memref<8x8x16xf32, #tpu.memory_space<vmem>>, vector<8x8x16xf32>
    %4 = vector.shape_cast %3 : vector<8x8x16xf32> to vector<64x16xf32>
    %c0_3 = arith.constant 0 : index
    %c0_4 = arith.constant 0 : index
    %5 = vector.load %arg3[%c0_3, %c0_4] : memref<16x512xf32, #tpu.memory_space<vmem>>, vector<16x512xf32>
    %cst = arith.constant dense<0.000000e+00> : vector<64x512xf32>
    %6 = tpu.matmul %4, %5, %cst {dimension_numbers = #tpu.dot_dimension_numbers<[1], [0], [0], [1], [0, 0, 1, 1], [], []>} : vector<64x16xf32>, vector<16x512xf32>, vector<64x512xf32> -> vector<64x512xf32>
    %c0_5 = arith.constant 0 : index
    %c0_6 = arith.constant 0 : index
    %7 = vector.load %arg5[%c0_5, %c0_6] : memref<1x512xf32, #tpu.memory_space<vmem>>, vector<1x512xf32>
    %8 = vector.broadcast %7 : vector<1x512xf32> to vector<64x512xf32>
    %9 = arith.addf %6, %8 : vector<64x512xf32>
    %10 = vector.shape_cast %9 : vector<64x512xf32> to vector<8x8x512xf32>
    %c0_7 = arith.constant 0 : index
    %c0_8 = arith.constant 0 : index
    %c0_9 = arith.constant 0 : index
    %11 = vector.load %arg11[%c0_7, %c0_8, %c0_9] : memref<8x8x512xf32, #tpu.memory_space<vmem>>, vector<8x8x512xf32>
    tpu.vector_store %arg11[%c0_7, %c0_8, %c0_9], %10 {strides = array<i32>} : memref<8x8x512xf32, #tpu.memory_space<vmem>>, vector<8x8x512xf32>,
    %c8_i32 = arith.constant 8 : i32
    %12 = arith.muli %arg1, %c8_i32 : i32
    %c0_i32_10 = arith.constant 0 : i32
    %c0_11 = arith.constant 0 : index
    %c0_12 = arith.constant 0 : index
    %13 = vector.load %arg4[%c0_11, %c0_12] : memref<128x512xf32, #tpu.memory_space<vmem>>, vector<128x512xf32>
    %14 = arith.index_cast %c0_i32_10 : i32 to index
    %c0_13 = arith.constant 0 : index
    %c0_14 = arith.constant 0 : index
    %15 = vector.load %arg11[%14, %c0_13, %c0_14] : memref<8x8x512xf32, #tpu.memory_space<vmem>>, vector<1x8x512xf32>
    %16 = vector.shape_cast %15 : vector<1x8x512xf32> to vector<8x512xf32>
    %c0_15 = arith.constant 0 : index
    %c0_16 = arith.constant 0 : index
    %17 = vector.load %arg9[%c0_15, %c0_16] : memref<8x128xf32, #tpu.memory_space<vmem>>, vector<8x128xf32>
    %c0_17 = arith.constant 0 : index
    %c0_18 = arith.constant 0 : index
    %18 = vector.load %arg10[%c0_17, %c0_18] : memref<8x128xf32, #tpu.memory_space<vmem>>, vector<8x128xf32>
    %cst_19 = arith.constant dense<0.000000e+00> : vector<8x512xf32>
    %19 = tpu.matmul %17, %13, %cst_19 {dimension_numbers = #tpu.dot_dimension_numbers<[1], [0], [0], [1], [0, 0, 1, 1], [], []>} : vector<8x128xf32>, vector<128x512xf32>, vector<8x512xf32> -> vector<8x512xf32>
    %20 = arith.addf %16, %19 : vector<8x512xf32>
    %21 = vector.extract_strided_slice %20 {offsets = [0, 0], sizes = [8, 128], strides = [1, 1]} : vector<8x512xf32> to vector<8x128xf32>
    %22 = arith.negf %21 : vector<8x128xf32>
    %23 = math.exp %22 : vector<8x128xf32>
    %cst_20 = arith.constant 1.000000e+00 : f32
    %24 = vector.broadcast %cst_20 : f32 to vector<8x128xf32>
    %25 = arith.addf %24, %23 : vector<8x128xf32>
    %26 = arith.divf %24, %25 : vector<8x128xf32>
    %27 = vector.extract_strided_slice %20 {offsets = [0, 128], sizes = [8, 128], strides = [1, 1]} : vector<8x512xf32> to vector<8x128xf32>
    %28 = arith.negf %27 : vector<8x128xf32>
    %29 = math.exp %28 : vector<8x128xf32>
    %cst_21 = arith.constant 1.000000e+00 : f32
    %30 = vector.broadcast %cst_21 : f32 to vector<8x128xf32>
    %31 = arith.addf %30, %29 : vector<8x128xf32>
    %32 = arith.divf %30, %31 : vector<8x128xf32>
    %33 = vector.extract_strided_slice %20 {offsets = [0, 256], sizes = [8, 128], strides = [1, 1]} : vector<8x512xf32> to vector<8x128xf32>
    %34 = math.tanh %33 : vector<8x128xf32>
    %35 = vector.extract_strided_slice %20 {offsets = [0, 384], sizes = [8, 128], strides = [1, 1]} : vector<8x512xf32> to vector<8x128xf32>
    %36 = arith.negf %35 : vector<8x128xf32>
    %37 = math.exp %36 : vector<8x128xf32>
    %cst_22 = arith.constant 1.000000e+00 : f32
    %38 = vector.broadcast %cst_22 : f32 to vector<8x128xf32>
    %39 = arith.addf %38, %37 : vector<8x128xf32>
    %40 = arith.divf %38, %39 : vector<8x128xf32>
    %41 = arith.mulf %32, %18 : vector<8x128xf32>
    %42 = arith.mulf %26, %34 : vector<8x128xf32>
    %43 = arith.addf %41, %42 : vector<8x128xf32>
    %44 = math.tanh %43 : vector<8x128xf32>
    %45 = arith.mulf %40, %44 : vector<8x128xf32>
    %46 = arith.addi %12, %c0_i32_10 : i32
    %c6_i32 = arith.constant 6 : i32
    %47 = arith.cmpi slt, %46, %c6_i32 : i32
    %48 = arith.extui %47 : i1 to i32
    %c0_i32_23 = arith.constant 0 : i32
    %49 = arith.cmpi ne, %48, %c0_i32_23 : i32
    scf.if %49 {
      %c0_126 = arith.constant 0 : index
      %c0_127 = arith.constant 0 : index
      %312 = vector.load %arg9[%c0_126, %c0_127] : memref<8x128xf32, #tpu.memory_space<vmem>>, vector<8x128xf32>
      tpu.vector_store %arg9[%c0_126, %c0_127], %45 {strides = array<i32>} : memref<8x128xf32, #tpu.memory_space<vmem>>, vector<8x128xf32>,
      %c0_128 = arith.constant 0 : index
      %c0_129 = arith.constant 0 : index
      %313 = vector.load %arg10[%c0_128, %c0_129] : memref<8x128xf32, #tpu.memory_space<vmem>>, vector<8x128xf32>
      tpu.vector_store %arg10[%c0_128, %c0_129], %43 {strides = array<i32>} : memref<8x128xf32, #tpu.memory_space<vmem>>, vector<8x128xf32>,
    } else {
    }
    %c1_i32 = arith.constant 1 : i32
    %c0_24 = arith.constant 0 : index
    %c0_25 = arith.constant 0 : index
    %50 = vector.load %arg4[%c0_24, %c0_25] : memref<128x512xf32, #tpu.memory_space<vmem>>, vector<128x512xf32>
    %51 = arith.index_cast %c1_i32 : i32 to index
    %c0_26 = arith.constant 0 : index
    %c0_27 = arith.constant 0 : index
    %52 = vector.load %arg11[%51, %c0_26, %c0_27] : memref<8x8x512xf32, #tpu.memory_space<vmem>>, vector<1x8x512xf32>
    %53 = vector.shape_cast %52 : vector<1x8x512xf32> to vector<8x512xf32>
    %c0_28 = arith.constant 0 : index
    %c0_29 = arith.constant 0 : index
    %54 = vector.load %arg9[%c0_28, %c0_29] : memref<8x128xf32, #tpu.memory_space<vmem>>, vector<8x128xf32>
    %c0_30 = arith.constant 0 : index
    %c0_31 = arith.constant 0 : index
    %55 = vector.load %arg10[%c0_30, %c0_31] : memref<8x128xf32, #tpu.memory_space<vmem>>, vector<8x128xf32>
    %cst_32 = arith.constant dense<0.000000e+00> : vector<8x512xf32>
    %56 = tpu.matmul %54, %50, %cst_32 {dimension_numbers = #tpu.dot_dimension_numbers<[1], [0], [0], [1], [0, 0, 1, 1], [], []>} : vector<8x128xf32>, vector<128x512xf32>, vector<8x512xf32> -> vector<8x512xf32>
    %57 = arith.addf %53, %56 : vector<8x512xf32>
    %58 = vector.extract_strided_slice %57 {offsets = [0, 0], sizes = [8, 128], strides = [1, 1]} : vector<8x512xf32> to vector<8x128xf32>
    %59 = arith.negf %58 : vector<8x128xf32>
    %60 = math.exp %59 : vector<8x128xf32>
    %cst_33 = arith.constant 1.000000e+00 : f32
    %61 = vector.broadcast %cst_33 : f32 to vector<8x128xf32>
    %62 = arith.addf %61, %60 : vector<8x128xf32>
    %63 = arith.divf %61, %62 : vector<8x128xf32>
    %64 = vector.extract_strided_slice %57 {offsets = [0, 128], sizes = [8, 128], strides = [1, 1]} : vector<8x512xf32> to vector<8x128xf32>
    %65 = arith.negf %64 : vector<8x128xf32>
    %66 = math.exp %65 : vector<8x128xf32>
    %cst_34 = arith.constant 1.000000e+00 : f32
    %67 = vector.broadcast %cst_34 : f32 to vector<8x128xf32>
    %68 = arith.addf %67, %66 : vector<8x128xf32>
    %69 = arith.divf %67, %68 : vector<8x128xf32>
    %70 = vector.extract_strided_slice %57 {offsets = [0, 256], sizes = [8, 128], strides = [1, 1]} : vector<8x512xf32> to vector<8x128xf32>
    %71 = math.tanh %70 : vector<8x128xf32>
    %72 = vector.extract_strided_slice %57 {offsets = [0, 384], sizes = [8, 128], strides = [1, 1]} : vector<8x512xf32> to vector<8x128xf32>
    %73 = arith.negf %72 : vector<8x128xf32>
    %74 = math.exp %73 : vector<8x128xf32>
    %cst_35 = arith.constant 1.000000e+00 : f32
    %75 = vector.broadcast %cst_35 : f32 to vector<8x128xf32>
    %76 = arith.addf %75, %74 : vector<8x128xf32>
    %77 = arith.divf %75, %76 : vector<8x128xf32>
    %78 = arith.mulf %69, %55 : vector<8x128xf32>
    %79 = arith.mulf %63, %71 : vector<8x128xf32>
    %80 = arith.addf %78, %79 : vector<8x128xf32>
    %81 = math.tanh %80 : vector<8x128xf32>
    %82 = arith.mulf %77, %81 : vector<8x128xf32>
    %83 = arith.addi %12, %c1_i32 : i32
    %c6_i32_36 = arith.constant 6 : i32
    %84 = arith.cmpi slt, %83, %c6_i32_36 : i32
    %85 = arith.extui %84 : i1 to i32
    %c0_i32_37 = arith.constant 0 : i32
    %86 = arith.cmpi ne, %85, %c0_i32_37 : i32
    scf.if %86 {
      %c0_126 = arith.constant 0 : index
      %c0_127 = arith.constant 0 : index
      %312 = vector.load %arg9[%c0_126, %c0_127] : memref<8x128xf32, #tpu.memory_space<vmem>>, vector<8x128xf32>
      tpu.vector_store %arg9[%c0_126, %c0_127], %82 {strides = array<i32>} : memref<8x128xf32, #tpu.memory_space<vmem>>, vector<8x128xf32>,
      %c0_128 = arith.constant 0 : index
      %c0_129 = arith.constant 0 : index
      %313 = vector.load %arg10[%c0_128, %c0_129] : memref<8x128xf32, #tpu.memory_space<vmem>>, vector<8x128xf32>
      tpu.vector_store %arg10[%c0_128, %c0_129], %80 {strides = array<i32>} : memref<8x128xf32, #tpu.memory_space<vmem>>, vector<8x128xf32>,
    } else {
    }
    %c2_i32 = arith.constant 2 : i32
    %c0_38 = arith.constant 0 : index
    %c0_39 = arith.constant 0 : index
    %87 = vector.load %arg4[%c0_38, %c0_39] : memref<128x512xf32, #tpu.memory_space<vmem>>, vector<128x512xf32>
    %88 = arith.index_cast %c2_i32 : i32 to index
    %c0_40 = arith.constant 0 : index
    %c0_41 = arith.constant 0 : index
    %89 = vector.load %arg11[%88, %c0_40, %c0_41] : memref<8x8x512xf32, #tpu.memory_space<vmem>>, vector<1x8x512xf32>
    %90 = vector.shape_cast %89 : vector<1x8x512xf32> to vector<8x512xf32>
    %c0_42 = arith.constant 0 : index
    %c0_43 = arith.constant 0 : index
    %91 = vector.load %arg9[%c0_42, %c0_43] : memref<8x128xf32, #tpu.memory_space<vmem>>, vector<8x128xf32>
    %c0_44 = arith.constant 0 : index
    %c0_45 = arith.constant 0 : index
    %92 = vector.load %arg10[%c0_44, %c0_45] : memref<8x128xf32, #tpu.memory_space<vmem>>, vector<8x128xf32>
    %cst_46 = arith.constant dense<0.000000e+00> : vector<8x512xf32>
    %93 = tpu.matmul %91, %87, %cst_46 {dimension_numbers = #tpu.dot_dimension_numbers<[1], [0], [0], [1], [0, 0, 1, 1], [], []>} : vector<8x128xf32>, vector<128x512xf32>, vector<8x512xf32> -> vector<8x512xf32>
    %94 = arith.addf %90, %93 : vector<8x512xf32>
    %95 = vector.extract_strided_slice %94 {offsets = [0, 0], sizes = [8, 128], strides = [1, 1]} : vector<8x512xf32> to vector<8x128xf32>
    %96 = arith.negf %95 : vector<8x128xf32>
    %97 = math.exp %96 : vector<8x128xf32>
    %cst_47 = arith.constant 1.000000e+00 : f32
    %98 = vector.broadcast %cst_47 : f32 to vector<8x128xf32>
    %99 = arith.addf %98, %97 : vector<8x128xf32>
    %100 = arith.divf %98, %99 : vector<8x128xf32>
    %101 = vector.extract_strided_slice %94 {offsets = [0, 128], sizes = [8, 128], strides = [1, 1]} : vector<8x512xf32> to vector<8x128xf32>
    %102 = arith.negf %101 : vector<8x128xf32>
    %103 = math.exp %102 : vector<8x128xf32>
    %cst_48 = arith.constant 1.000000e+00 : f32
    %104 = vector.broadcast %cst_48 : f32 to vector<8x128xf32>
    %105 = arith.addf %104, %103 : vector<8x128xf32>
    %106 = arith.divf %104, %105 : vector<8x128xf32>
    %107 = vector.extract_strided_slice %94 {offsets = [0, 256], sizes = [8, 128], strides = [1, 1]} : vector<8x512xf32> to vector<8x128xf32>
    %108 = math.tanh %107 : vector<8x128xf32>
    %109 = vector.extract_strided_slice %94 {offsets = [0, 384], sizes = [8, 128], strides = [1, 1]} : vector<8x512xf32> to vector<8x128xf32>
    %110 = arith.negf %109 : vector<8x128xf32>
    %111 = math.exp %110 : vector<8x128xf32>
    %cst_49 = arith.constant 1.000000e+00 : f32
    %112 = vector.broadcast %cst_49 : f32 to vector<8x128xf32>
    %113 = arith.addf %112, %111 : vector<8x128xf32>
    %114 = arith.divf %112, %113 : vector<8x128xf32>
    %115 = arith.mulf %106, %92 : vector<8x128xf32>
    %116 = arith.mulf %100, %108 : vector<8x128xf32>
    %117 = arith.addf %115, %116 : vector<8x128xf32>
    %118 = math.tanh %117 : vector<8x128xf32>
    %119 = arith.mulf %114, %118 : vector<8x128xf32>
    %120 = arith.addi %12, %c2_i32 : i32
    %c6_i32_50 = arith.constant 6 : i32
    %121 = arith.cmpi slt, %120, %c6_i32_50 : i32
    %122 = arith.extui %121 : i1 to i32
    %c0_i32_51 = arith.constant 0 : i32
    %123 = arith.cmpi ne, %122, %c0_i32_51 : i32
    scf.if %123 {
      %c0_126 = arith.constant 0 : index
      %c0_127 = arith.constant 0 : index
      %312 = vector.load %arg9[%c0_126, %c0_127] : memref<8x128xf32, #tpu.memory_space<vmem>>, vector<8x128xf32>
      tpu.vector_store %arg9[%c0_126, %c0_127], %119 {strides = array<i32>} : memref<8x128xf32, #tpu.memory_space<vmem>>, vector<8x128xf32>,
      %c0_128 = arith.constant 0 : index
      %c0_129 = arith.constant 0 : index
      %313 = vector.load %arg10[%c0_128, %c0_129] : memref<8x128xf32, #tpu.memory_space<vmem>>, vector<8x128xf32>
      tpu.vector_store %arg10[%c0_128, %c0_129], %117 {strides = array<i32>} : memref<8x128xf32, #tpu.memory_space<vmem>>, vector<8x128xf32>,
    } else {
    }
    %c3_i32 = arith.constant 3 : i32
    %c0_52 = arith.constant 0 : index
    %c0_53 = arith.constant 0 : index
    %124 = vector.load %arg4[%c0_52, %c0_53] : memref<128x512xf32, #tpu.memory_space<vmem>>, vector<128x512xf32>
    %125 = arith.index_cast %c3_i32 : i32 to index
    %c0_54 = arith.constant 0 : index
    %c0_55 = arith.constant 0 : index
    %126 = vector.load %arg11[%125, %c0_54, %c0_55] : memref<8x8x512xf32, #tpu.memory_space<vmem>>, vector<1x8x512xf32>
    %127 = vector.shape_cast %126 : vector<1x8x512xf32> to vector<8x512xf32>
    %c0_56 = arith.constant 0 : index
    %c0_57 = arith.constant 0 : index
    %128 = vector.load %arg9[%c0_56, %c0_57] : memref<8x128xf32, #tpu.memory_space<vmem>>, vector<8x128xf32>
    %c0_58 = arith.constant 0 : index
    %c0_59 = arith.constant 0 : index
    %129 = vector.load %arg10[%c0_58, %c0_59] : memref<8x128xf32, #tpu.memory_space<vmem>>, vector<8x128xf32>
    %cst_60 = arith.constant dense<0.000000e+00> : vector<8x512xf32>
    %130 = tpu.matmul %128, %124, %cst_60 {dimension_numbers = #tpu.dot_dimension_numbers<[1], [0], [0], [1], [0, 0, 1, 1], [], []>} : vector<8x128xf32>, vector<128x512xf32>, vector<8x512xf32> -> vector<8x512xf32>
    %131 = arith.addf %127, %130 : vector<8x512xf32>
    %132 = vector.extract_strided_slice %131 {offsets = [0, 0], sizes = [8, 128], strides = [1, 1]} : vector<8x512xf32> to vector<8x128xf32>
    %133 = arith.negf %132 : vector<8x128xf32>
    %134 = math.exp %133 : vector<8x128xf32>
    %cst_61 = arith.constant 1.000000e+00 : f32
    %135 = vector.broadcast %cst_61 : f32 to vector<8x128xf32>
    %136 = arith.addf %135, %134 : vector<8x128xf32>
    %137 = arith.divf %135, %136 : vector<8x128xf32>
    %138 = vector.extract_strided_slice %131 {offsets = [0, 128], sizes = [8, 128], strides = [1, 1]} : vector<8x512xf32> to vector<8x128xf32>
    %139 = arith.negf %138 : vector<8x128xf32>
    %140 = math.exp %139 : vector<8x128xf32>
    %cst_62 = arith.constant 1.000000e+00 : f32
    %141 = vector.broadcast %cst_62 : f32 to vector<8x128xf32>
    %142 = arith.addf %141, %140 : vector<8x128xf32>
    %143 = arith.divf %141, %142 : vector<8x128xf32>
    %144 = vector.extract_strided_slice %131 {offsets = [0, 256], sizes = [8, 128], strides = [1, 1]} : vector<8x512xf32> to vector<8x128xf32>
    %145 = math.tanh %144 : vector<8x128xf32>
    %146 = vector.extract_strided_slice %131 {offsets = [0, 384], sizes = [8, 128], strides = [1, 1]} : vector<8x512xf32> to vector<8x128xf32>
    %147 = arith.negf %146 : vector<8x128xf32>
    %148 = math.exp %147 : vector<8x128xf32>
    %cst_63 = arith.constant 1.000000e+00 : f32
    %149 = vector.broadcast %cst_63 : f32 to vector<8x128xf32>
    %150 = arith.addf %149, %148 : vector<8x128xf32>
    %151 = arith.divf %149, %150 : vector<8x128xf32>
    %152 = arith.mulf %143, %129 : vector<8x128xf32>
    %153 = arith.mulf %137, %145 : vector<8x128xf32>
    %154 = arith.addf %152, %153 : vector<8x128xf32>
    %155 = math.tanh %154 : vector<8x128xf32>
    %156 = arith.mulf %151, %155 : vector<8x128xf32>
    %157 = arith.addi %12, %c3_i32 : i32
    %c6_i32_64 = arith.constant 6 : i32
    %158 = arith.cmpi slt, %157, %c6_i32_64 : i32
    %159 = arith.extui %158 : i1 to i32
    %c0_i32_65 = arith.constant 0 : i32
    %160 = arith.cmpi ne, %159, %c0_i32_65 : i32
    scf.if %160 {
      %c0_126 = arith.constant 0 : index
      %c0_127 = arith.constant 0 : index
      %312 = vector.load %arg9[%c0_126, %c0_127] : memref<8x128xf32, #tpu.memory_space<vmem>>, vector<8x128xf32>
      tpu.vector_store %arg9[%c0_126, %c0_127], %156 {strides = array<i32>} : memref<8x128xf32, #tpu.memory_space<vmem>>, vector<8x128xf32>,
      %c0_128 = arith.constant 0 : index
      %c0_129 = arith.constant 0 : index
      %313 = vector.load %arg10[%c0_128, %c0_129] : memref<8x128xf32, #tpu.memory_space<vmem>>, vector<8x128xf32>
      tpu.vector_store %arg10[%c0_128, %c0_129], %154 {strides = array<i32>} : memref<8x128xf32, #tpu.memory_space<vmem>>, vector<8x128xf32>,
    } else {
    }
    %c4_i32 = arith.constant 4 : i32
    %c0_66 = arith.constant 0 : index
    %c0_67 = arith.constant 0 : index
    %161 = vector.load %arg4[%c0_66, %c0_67] : memref<128x512xf32, #tpu.memory_space<vmem>>, vector<128x512xf32>
    %162 = arith.index_cast %c4_i32 : i32 to index
    %c0_68 = arith.constant 0 : index
    %c0_69 = arith.constant 0 : index
    %163 = vector.load %arg11[%162, %c0_68, %c0_69] : memref<8x8x512xf32, #tpu.memory_space<vmem>>, vector<1x8x512xf32>
    %164 = vector.shape_cast %163 : vector<1x8x512xf32> to vector<8x512xf32>
    %c0_70 = arith.constant 0 : index
    %c0_71 = arith.constant 0 : index
    %165 = vector.load %arg9[%c0_70, %c0_71] : memref<8x128xf32, #tpu.memory_space<vmem>>, vector<8x128xf32>
    %c0_72 = arith.constant 0 : index
    %c0_73 = arith.constant 0 : index
    %166 = vector.load %arg10[%c0_72, %c0_73] : memref<8x128xf32, #tpu.memory_space<vmem>>, vector<8x128xf32>
    %cst_74 = arith.constant dense<0.000000e+00> : vector<8x512xf32>
    %167 = tpu.matmul %165, %161, %cst_74 {dimension_numbers = #tpu.dot_dimension_numbers<[1], [0], [0], [1], [0, 0, 1, 1], [], []>} : vector<8x128xf32>, vector<128x512xf32>, vector<8x512xf32> -> vector<8x512xf32>
    %168 = arith.addf %164, %167 : vector<8x512xf32>
    %169 = vector.extract_strided_slice %168 {offsets = [0, 0], sizes = [8, 128], strides = [1, 1]} : vector<8x512xf32> to vector<8x128xf32>
    %170 = arith.negf %169 : vector<8x128xf32>
    %171 = math.exp %170 : vector<8x128xf32>
    %cst_75 = arith.constant 1.000000e+00 : f32
    %172 = vector.broadcast %cst_75 : f32 to vector<8x128xf32>
    %173 = arith.addf %172, %171 : vector<8x128xf32>
    %174 = arith.divf %172, %173 : vector<8x128xf32>
    %175 = vector.extract_strided_slice %168 {offsets = [0, 128], sizes = [8, 128], strides = [1, 1]} : vector<8x512xf32> to vector<8x128xf32>
    %176 = arith.negf %175 : vector<8x128xf32>
    %177 = math.exp %176 : vector<8x128xf32>
    %cst_76 = arith.constant 1.000000e+00 : f32
    %178 = vector.broadcast %cst_76 : f32 to vector<8x128xf32>
    %179 = arith.addf %178, %177 : vector<8x128xf32>
    %180 = arith.divf %178, %179 : vector<8x128xf32>
    %181 = vector.extract_strided_slice %168 {offsets = [0, 256], sizes = [8, 128], strides = [1, 1]} : vector<8x512xf32> to vector<8x128xf32>
    %182 = math.tanh %181 : vector<8x128xf32>
    %183 = vector.extract_strided_slice %168 {offsets = [0, 384], sizes = [8, 128], strides = [1, 1]} : vector<8x512xf32> to vector<8x128xf32>
    %184 = arith.negf %183 : vector<8x128xf32>
    %185 = math.exp %184 : vector<8x128xf32>
    %cst_77 = arith.constant 1.000000e+00 : f32
    %186 = vector.broadcast %cst_77 : f32 to vector<8x128xf32>
    %187 = arith.addf %186, %185 : vector<8x128xf32>
    %188 = arith.divf %186, %187 : vector<8x128xf32>
    %189 = arith.mulf %180, %166 : vector<8x128xf32>
    %190 = arith.mulf %174, %182 : vector<8x128xf32>
    %191 = arith.addf %189, %190 : vector<8x128xf32>
    %192 = math.tanh %191 : vector<8x128xf32>
    %193 = arith.mulf %188, %192 : vector<8x128xf32>
    %194 = arith.addi %12, %c4_i32 : i32
    %c6_i32_78 = arith.constant 6 : i32
    %195 = arith.cmpi slt, %194, %c6_i32_78 : i32
    %196 = arith.extui %195 : i1 to i32
    %c0_i32_79 = arith.constant 0 : i32
    %197 = arith.cmpi ne, %196, %c0_i32_79 : i32
    scf.if %197 {
      %c0_126 = arith.constant 0 : index
      %c0_127 = arith.constant 0 : index
      %312 = vector.load %arg9[%c0_126, %c0_127] : memref<8x128xf32, #tpu.memory_space<vmem>>, vector<8x128xf32>
      tpu.vector_store %arg9[%c0_126, %c0_127], %193 {strides = array<i32>} : memref<8x128xf32, #tpu.memory_space<vmem>>, vector<8x128xf32>,
      %c0_128 = arith.constant 0 : index
      %c0_129 = arith.constant 0 : index
      %313 = vector.load %arg10[%c0_128, %c0_129] : memref<8x128xf32, #tpu.memory_space<vmem>>, vector<8x128xf32>
      tpu.vector_store %arg10[%c0_128, %c0_129], %191 {strides = array<i32>} : memref<8x128xf32, #tpu.memory_space<vmem>>, vector<8x128xf32>,
    } else {
    }
    %c5_i32 = arith.constant 5 : i32
    %c0_80 = arith.constant 0 : index
    %c0_81 = arith.constant 0 : index
    %198 = vector.load %arg4[%c0_80, %c0_81] : memref<128x512xf32, #tpu.memory_space<vmem>>, vector<128x512xf32>
    %199 = arith.index_cast %c5_i32 : i32 to index
    %c0_82 = arith.constant 0 : index
    %c0_83 = arith.constant 0 : index
    %200 = vector.load %arg11[%199, %c0_82, %c0_83] : memref<8x8x512xf32, #tpu.memory_space<vmem>>, vector<1x8x512xf32>
    %201 = vector.shape_cast %200 : vector<1x8x512xf32> to vector<8x512xf32>
    %c0_84 = arith.constant 0 : index
    %c0_85 = arith.constant 0 : index
    %202 = vector.load %arg9[%c0_84, %c0_85] : memref<8x128xf32, #tpu.memory_space<vmem>>, vector<8x128xf32>
    %c0_86 = arith.constant 0 : index
    %c0_87 = arith.constant 0 : index
    %203 = vector.load %arg10[%c0_86, %c0_87] : memref<8x128xf32, #tpu.memory_space<vmem>>, vector<8x128xf32>
    %cst_88 = arith.constant dense<0.000000e+00> : vector<8x512xf32>
    %204 = tpu.matmul %202, %198, %cst_88 {dimension_numbers = #tpu.dot_dimension_numbers<[1], [0], [0], [1], [0, 0, 1, 1], [], []>} : vector<8x128xf32>, vector<128x512xf32>, vector<8x512xf32> -> vector<8x512xf32>
    %205 = arith.addf %201, %204 : vector<8x512xf32>
    %206 = vector.extract_strided_slice %205 {offsets = [0, 0], sizes = [8, 128], strides = [1, 1]} : vector<8x512xf32> to vector<8x128xf32>
    %207 = arith.negf %206 : vector<8x128xf32>
    %208 = math.exp %207 : vector<8x128xf32>
    %cst_89 = arith.constant 1.000000e+00 : f32
    %209 = vector.broadcast %cst_89 : f32 to vector<8x128xf32>
    %210 = arith.addf %209, %208 : vector<8x128xf32>
    %211 = arith.divf %209, %210 : vector<8x128xf32>
    %212 = vector.extract_strided_slice %205 {offsets = [0, 128], sizes = [8, 128], strides = [1, 1]} : vector<8x512xf32> to vector<8x128xf32>
    %213 = arith.negf %212 : vector<8x128xf32>
    %214 = math.exp %213 : vector<8x128xf32>
    %cst_90 = arith.constant 1.000000e+00 : f32
    %215 = vector.broadcast %cst_90 : f32 to vector<8x128xf32>
    %216 = arith.addf %215, %214 : vector<8x128xf32>
    %217 = arith.divf %215, %216 : vector<8x128xf32>
    %218 = vector.extract_strided_slice %205 {offsets = [0, 256], sizes = [8, 128], strides = [1, 1]} : vector<8x512xf32> to vector<8x128xf32>
    %219 = math.tanh %218 : vector<8x128xf32>
    %220 = vector.extract_strided_slice %205 {offsets = [0, 384], sizes = [8, 128], strides = [1, 1]} : vector<8x512xf32> to vector<8x128xf32>
    %221 = arith.negf %220 : vector<8x128xf32>
    %222 = math.exp %221 : vector<8x128xf32>
    %cst_91 = arith.constant 1.000000e+00 : f32
    %223 = vector.broadcast %cst_91 : f32 to vector<8x128xf32>
    %224 = arith.addf %223, %222 : vector<8x128xf32>
    %225 = arith.divf %223, %224 : vector<8x128xf32>
    %226 = arith.mulf %217, %203 : vector<8x128xf32>
    %227 = arith.mulf %211, %219 : vector<8x128xf32>
    %228 = arith.addf %226, %227 : vector<8x128xf32>
    %229 = math.tanh %228 : vector<8x128xf32>
    %230 = arith.mulf %225, %229 : vector<8x128xf32>
    %231 = arith.addi %12, %c5_i32 : i32
    %c6_i32_92 = arith.constant 6 : i32
    %232 = arith.cmpi slt, %231, %c6_i32_92 : i32
    %233 = arith.extui %232 : i1 to i32
    %c0_i32_93 = arith.constant 0 : i32
    %234 = arith.cmpi ne, %233, %c0_i32_93 : i32
    scf.if %234 {
      %c0_126 = arith.constant 0 : index
      %c0_127 = arith.constant 0 : index
      %312 = vector.load %arg9[%c0_126, %c0_127] : memref<8x128xf32, #tpu.memory_space<vmem>>, vector<8x128xf32>
      tpu.vector_store %arg9[%c0_126, %c0_127], %230 {strides = array<i32>} : memref<8x128xf32, #tpu.memory_space<vmem>>, vector<8x128xf32>,
      %c0_128 = arith.constant 0 : index
      %c0_129 = arith.constant 0 : index
      %313 = vector.load %arg10[%c0_128, %c0_129] : memref<8x128xf32, #tpu.memory_space<vmem>>, vector<8x128xf32>
      tpu.vector_store %arg10[%c0_128, %c0_129], %228 {strides = array<i32>} : memref<8x128xf32, #tpu.memory_space<vmem>>, vector<8x128xf32>,
    } else {
    }
    %c6_i32_94 = arith.constant 6 : i32
    %c0_95 = arith.constant 0 : index
    %c0_96 = arith.constant 0 : index
    %235 = vector.load %arg4[%c0_95, %c0_96] : memref<128x512xf32, #tpu.memory_space<vmem>>, vector<128x512xf32>
    %236 = arith.index_cast %c6_i32_94 : i32 to index
    %c0_97 = arith.constant 0 : index
    %c0_98 = arith.constant 0 : index
    %237 = vector.load %arg11[%236, %c0_97, %c0_98] : memref<8x8x512xf32, #tpu.memory_space<vmem>>, vector<1x8x512xf32>
    %238 = vector.shape_cast %237 : vector<1x8x512xf32> to vector<8x512xf32>
    %c0_99 = arith.constant 0 : index
    %c0_100 = arith.constant 0 : index
    %239 = vector.load %arg9[%c0_99, %c0_100] : memref<8x128xf32, #tpu.memory_space<vmem>>, vector<8x128xf32>
    %c0_101 = arith.constant 0 : index
    %c0_102 = arith.constant 0 : index
    %240 = vector.load %arg10[%c0_101, %c0_102] : memref<8x128xf32, #tpu.memory_space<vmem>>, vector<8x128xf32>
    %cst_103 = arith.constant dense<0.000000e+00> : vector<8x512xf32>
    %241 = tpu.matmul %239, %235, %cst_103 {dimension_numbers = #tpu.dot_dimension_numbers<[1], [0], [0], [1], [0, 0, 1, 1], [], []>} : vector<8x128xf32>, vector<128x512xf32>, vector<8x512xf32> -> vector<8x512xf32>
    %242 = arith.addf %238, %241 : vector<8x512xf32>
    %243 = vector.extract_strided_slice %242 {offsets = [0, 0], sizes = [8, 128], strides = [1, 1]} : vector<8x512xf32> to vector<8x128xf32>
    %244 = arith.negf %243 : vector<8x128xf32>
    %245 = math.exp %244 : vector<8x128xf32>
    %cst_104 = arith.constant 1.000000e+00 : f32
    %246 = vector.broadcast %cst_104 : f32 to vector<8x128xf32>
    %247 = arith.addf %246, %245 : vector<8x128xf32>
    %248 = arith.divf %246, %247 : vector<8x128xf32>
    %249 = vector.extract_strided_slice %242 {offsets = [0, 128], sizes = [8, 128], strides = [1, 1]} : vector<8x512xf32> to vector<8x128xf32>
    %250 = arith.negf %249 : vector<8x128xf32>
    %251 = math.exp %250 : vector<8x128xf32>
    %cst_105 = arith.constant 1.000000e+00 : f32
    %252 = vector.broadcast %cst_105 : f32 to vector<8x128xf32>
    %253 = arith.addf %252, %251 : vector<8x128xf32>
    %254 = arith.divf %252, %253 : vector<8x128xf32>
    %255 = vector.extract_strided_slice %242 {offsets = [0, 256], sizes = [8, 128], strides = [1, 1]} : vector<8x512xf32> to vector<8x128xf32>
    %256 = math.tanh %255 : vector<8x128xf32>
    %257 = vector.extract_strided_slice %242 {offsets = [0, 384], sizes = [8, 128], strides = [1, 1]} : vector<8x512xf32> to vector<8x128xf32>
    %258 = arith.negf %257 : vector<8x128xf32>
    %259 = math.exp %258 : vector<8x128xf32>
    %cst_106 = arith.constant 1.000000e+00 : f32
    %260 = vector.broadcast %cst_106 : f32 to vector<8x128xf32>
    %261 = arith.addf %260, %259 : vector<8x128xf32>
    %262 = arith.divf %260, %261 : vector<8x128xf32>
    %263 = arith.mulf %254, %240 : vector<8x128xf32>
    %264 = arith.mulf %248, %256 : vector<8x128xf32>
    %265 = arith.addf %263, %264 : vector<8x128xf32>
    %266 = math.tanh %265 : vector<8x128xf32>
    %267 = arith.mulf %262, %266 : vector<8x128xf32>
    %268 = arith.addi %12, %c6_i32_94 : i32
    %c6_i32_107 = arith.constant 6 : i32
    %269 = arith.cmpi slt, %268, %c6_i32_107 : i32
    %270 = arith.extui %269 : i1 to i32
    %c0_i32_108 = arith.constant 0 : i32
    %271 = arith.cmpi ne, %270, %c0_i32_108 : i32
    scf.if %271 {
      %c0_126 = arith.constant 0 : index
      %c0_127 = arith.constant 0 : index
      %312 = vector.load %arg9[%c0_126, %c0_127] : memref<8x128xf32, #tpu.memory_space<vmem>>, vector<8x128xf32>
      tpu.vector_store %arg9[%c0_126, %c0_127], %267 {strides = array<i32>} : memref<8x128xf32, #tpu.memory_space<vmem>>, vector<8x128xf32>,
      %c0_128 = arith.constant 0 : index
      %c0_129 = arith.constant 0 : index
      %313 = vector.load %arg10[%c0_128, %c0_129] : memref<8x128xf32, #tpu.memory_space<vmem>>, vector<8x128xf32>
      tpu.vector_store %arg10[%c0_128, %c0_129], %265 {strides = array<i32>} : memref<8x128xf32, #tpu.memory_space<vmem>>, vector<8x128xf32>,
    } else {
    }
    %c7_i32 = arith.constant 7 : i32
    %c0_109 = arith.constant 0 : index
    %c0_110 = arith.constant 0 : index
    %272 = vector.load %arg4[%c0_109, %c0_110] : memref<128x512xf32, #tpu.memory_space<vmem>>, vector<128x512xf32>
    %273 = arith.index_cast %c7_i32 : i32 to index
    %c0_111 = arith.constant 0 : index
    %c0_112 = arith.constant 0 : index
    %274 = vector.load %arg11[%273, %c0_111, %c0_112] : memref<8x8x512xf32, #tpu.memory_space<vmem>>, vector<1x8x512xf32>
    %275 = vector.shape_cast %274 : vector<1x8x512xf32> to vector<8x512xf32>
    %c0_113 = arith.constant 0 : index
    %c0_114 = arith.constant 0 : index
    %276 = vector.load %arg9[%c0_113, %c0_114] : memref<8x128xf32, #tpu.memory_space<vmem>>, vector<8x128xf32>
    %c0_115 = arith.constant 0 : index
    %c0_116 = arith.constant 0 : index
    %277 = vector.load %arg10[%c0_115, %c0_116] : memref<8x128xf32, #tpu.memory_space<vmem>>, vector<8x128xf32>
    %cst_117 = arith.constant dense<0.000000e+00> : vector<8x512xf32>
    %278 = tpu.matmul %276, %272, %cst_117 {dimension_numbers = #tpu.dot_dimension_numbers<[1], [0], [0], [1], [0, 0, 1, 1], [], []>} : vector<8x128xf32>, vector<128x512xf32>, vector<8x512xf32> -> vector<8x512xf32>
    %279 = arith.addf %275, %278 : vector<8x512xf32>
    %280 = vector.extract_strided_slice %279 {offsets = [0, 0], sizes = [8, 128], strides = [1, 1]} : vector<8x512xf32> to vector<8x128xf32>
    %281 = arith.negf %280 : vector<8x128xf32>
    %282 = math.exp %281 : vector<8x128xf32>
    %cst_118 = arith.constant 1.000000e+00 : f32
    %283 = vector.broadcast %cst_118 : f32 to vector<8x128xf32>
    %284 = arith.addf %283, %282 : vector<8x128xf32>
    %285 = arith.divf %283, %284 : vector<8x128xf32>
    %286 = vector.extract_strided_slice %279 {offsets = [0, 128], sizes = [8, 128], strides = [1, 1]} : vector<8x512xf32> to vector<8x128xf32>
    %287 = arith.negf %286 : vector<8x128xf32>
    %288 = math.exp %287 : vector<8x128xf32>
    %cst_119 = arith.constant 1.000000e+00 : f32
    %289 = vector.broadcast %cst_119 : f32 to vector<8x128xf32>
    %290 = arith.addf %289, %288 : vector<8x128xf32>
    %291 = arith.divf %289, %290 : vector<8x128xf32>
    %292 = vector.extract_strided_slice %279 {offsets = [0, 256], sizes = [8, 128], strides = [1, 1]} : vector<8x512xf32> to vector<8x128xf32>
    %293 = math.tanh %292 : vector<8x128xf32>
    %294 = vector.extract_strided_slice %279 {offsets = [0, 384], sizes = [8, 128], strides = [1, 1]} : vector<8x512xf32> to vector<8x128xf32>
    %295 = arith.negf %294 : vector<8x128xf32>
    %296 = math.exp %295 : vector<8x128xf32>
    %cst_120 = arith.constant 1.000000e+00 : f32
    %297 = vector.broadcast %cst_120 : f32 to vector<8x128xf32>
    %298 = arith.addf %297, %296 : vector<8x128xf32>
    %299 = arith.divf %297, %298 : vector<8x128xf32>
    %300 = arith.mulf %291, %277 : vector<8x128xf32>
    %301 = arith.mulf %285, %293 : vector<8x128xf32>
    %302 = arith.addf %300, %301 : vector<8x128xf32>
    %303 = math.tanh %302 : vector<8x128xf32>
    %304 = arith.mulf %299, %303 : vector<8x128xf32>
    %305 = arith.addi %12, %c7_i32 : i32
    %c6_i32_121 = arith.constant 6 : i32
    %306 = arith.cmpi slt, %305, %c6_i32_121 : i32
    %307 = arith.extui %306 : i1 to i32
    %c0_i32_122 = arith.constant 0 : i32
    %308 = arith.cmpi ne, %307, %c0_i32_122 : i32
    scf.if %308 {
      %c0_126 = arith.constant 0 : index
      %c0_127 = arith.constant 0 : index
      %312 = vector.load %arg9[%c0_126, %c0_127] : memref<8x128xf32, #tpu.memory_space<vmem>>, vector<8x128xf32>
      tpu.vector_store %arg9[%c0_126, %c0_127], %304 {strides = array<i32>} : memref<8x128xf32, #tpu.memory_space<vmem>>, vector<8x128xf32>,
      %c0_128 = arith.constant 0 : index
      %c0_129 = arith.constant 0 : index
      %313 = vector.load %arg10[%c0_128, %c0_129] : memref<8x128xf32, #tpu.memory_space<vmem>>, vector<8x128xf32>
      tpu.vector_store %arg10[%c0_128, %c0_129], %302 {strides = array<i32>} : memref<8x128xf32, #tpu.memory_space<vmem>>, vector<8x128xf32>,
    } else {
    }
    %c8_i32_123 = arith.constant 8 : i32
    %c0_i32_124 = arith.constant 0 : i32
    %309 = arith.cmpi eq, %arg1, %c0_i32_124 : i32
    %310 = arith.extui %309 : i1 to i32
    %c0_i32_125 = arith.constant 0 : i32
    %311 = arith.cmpi ne, %310, %c0_i32_125 : i32
    scf.if %311 {
      %c0_126 = arith.constant 0 : index
      %c0_127 = arith.constant 0 : index
      %312 = vector.load %arg9[%c0_126, %c0_127] : memref<8x128xf32, #tpu.memory_space<vmem>>, vector<8x128xf32>
      %c0_128 = arith.constant 0 : index
      %c0_129 = arith.constant 0 : index
      %313 = vector.load %arg6[%c0_128, %c0_129] : memref<128x8xf32, #tpu.memory_space<vmem>>, vector<128x8xf32>
      %cst_130 = arith.constant dense<0.000000e+00> : vector<8x8xf32>
      %314 = tpu.matmul %312, %313, %cst_130 {dimension_numbers = #tpu.dot_dimension_numbers<[1], [0], [0], [1], [0, 0, 1, 1], [], []>} : vector<8x128xf32>, vector<128x8xf32>, vector<8x8xf32> -> vector<8x8xf32>
      %c0_131 = arith.constant 0 : index
      %c0_132 = arith.constant 0 : index
      %315 = vector.load %arg7[%c0_131, %c0_132] : memref<1x8xf32, #tpu.memory_space<vmem>>, vector<1x8xf32>
      %316 = vector.broadcast %315 : vector<1x8xf32> to vector<8x8xf32>
      %317 = arith.addf %314, %316 : vector<8x8xf32>
      %c0_133 = arith.constant 0 : index
      %c0_134 = arith.constant 0 : index
      %318 = vector.load %arg8[%c0_133, %c0_134] : memref<8x8xf32, #tpu.memory_space<vmem>>, vector<8x8xf32>
      tpu.vector_store %arg8[%c0_133, %c0_134], %317 {strides = array<i32>} : memref<8x8xf32, #tpu.memory_space<vmem>>, vector<8x8xf32>,
    } else {
    }
    return
  }
  func.func @transform_0(%arg0: i32, %arg1: i32) -> (i32, i32, i32) {
    %c0_i32 = arith.constant 0 : i32
    %c0_i32_0 = arith.constant 0 : i32
    return %arg1, %arg0, %c0_i32 : i32, i32, i32
  }
  func.func @transform_1(%arg0: i32, %arg1: i32) -> (i32, i32) {
    %c0_i32 = arith.constant 0 : i32
    %c0_i32_0 = arith.constant 0 : i32
    %c0_i32_1 = arith.constant 0 : i32
    return %c0_i32, %c0_i32_0 : i32, i32
  }
  func.func @transform_2(%arg0: i32, %arg1: i32) -> (i32, i32) {
    %c0_i32 = arith.constant 0 : i32
    %c0_i32_0 = arith.constant 0 : i32
    %c0_i32_1 = arith.constant 0 : i32
    return %c0_i32, %c0_i32_0 : i32, i32
  }
  func.func @transform_3(%arg0: i32, %arg1: i32) -> (i32, i32) {
    %c0_i32 = arith.constant 0 : i32
    %c0_i32_0 = arith.constant 0 : i32
    %c0_i32_1 = arith.constant 0 : i32
    return %c0_i32, %c0_i32_0 : i32, i32
  }
  func.func @transform_4(%arg0: i32, %arg1: i32) -> (i32, i32) {
    %c0_i32 = arith.constant 0 : i32
    %c0_i32_0 = arith.constant 0 : i32
    %c0_i32_1 = arith.constant 0 : i32
    return %c0_i32, %c0_i32_0 : i32, i32
  }
  func.func @transform_5(%arg0: i32, %arg1: i32) -> (i32, i32) {
    %c0_i32 = arith.constant 0 : i32
    %c0_i32_0 = arith.constant 0 : i32
    %c0_i32_1 = arith.constant 0 : i32
    return %c0_i32, %c0_i32_0 : i32, i32
  }
  func.func @transform_6(%arg0: i32, %arg1: i32) -> (i32, i32) {
    %c0_i32 = arith.constant 0 : i32
    %c0_i32_0 = arith.constant 0 : i32
    return %arg0, %c0_i32 : i32, i32
  }
}

</mosaic_0001>

<bundles_post_ra>
// kernel: tpu_custom_call.1
= control target key start
LH: loop header
LB: loop body
LE: loop exit
PB: predicated region body
PF: predicated region fallthrough
CT: control target
= control target key end

     0   :  { %11 = vsyncpa [#allocation6], 0  ;;  %s3611_s0 = inlined_call_operand.vmem [shape: f32[8,8,16], index: 0, kind: input, shape index: {}]   ;;  %s3612_s1 = inlined_call_operand.vmem [shape: f32[16,512], index: 1, kind: input, shape index: {}]   ;;  %s3613_s2 = inlined_call_operand.hbm [shape: f32[128,512], index: 2, kind: input, shape index: {}]   ;;  %s3614_s3 = inlined_call_operand.vmem [shape: f32[1,512], index: 3, kind: input, shape index: {}]   ;;  %s3615_s4 = inlined_call_operand.vmem [shape: f32[128,8], index: 4, kind: input, shape index: {}]   ;;  %s3616_s5 = inlined_call_operand.vmem [shape: f32[1,8], index: 5, kind: input, shape index: {}]   ;;  %s3617_s6 = inlined_call_operand.hbm [shape: f32[8,8], index: 6, kind: output, shape index: {}]  }
   0x1   :  { %12 = vsyncpa [#allocation7], 0  ;;  %s21_s23 = sshll.u32 %s3613_s2, 4  ;;  %s2371_s24 = smov [#allocation5]   ;;  %s22_s23 = int_to_ptr.hbm [resolvable:$true] %s21_s23 }
   0x2   :  { %s23_s25 = sshll.u32 %s2371_s24, 4  ;;  %s2372_s26 = smov 512   ;;  %s24_s25 = int_to_ptr.vmem [resolvable:$true] %s23_s25 }
   0x3   :  { %s2373_s27 = smov 32  }
   0x4   :  { %29 = dma.hbm_to_vmem [thread:$0]  %s22_s23, 8192, %s24_s25, [#allocation6], %s2372_s26, %s2372_s26, %s2373_s27  }
   0x5   :  { %2367 = dma.done.wait [#allocation6], 8192  }
   0x6   :  { %2368 = vsyncadd [#allocation6], 4294959104  ;;  %v58_v0 = vld [vmem:[%s3612_s1 + $0x20] sm:$0xff]  ;;  %vm72_vm0 = vcmask 130048   ;;  %v2426_v3 = vld [vmem:[%s3611_s0 + $0x28] sm:$0xff]  ;;  %s2375_s15 = smov [#allocation8]  }
   0x7   :  { %v54_v1 = vld [vmem:[%s3612_s1] sm:$0xff]  ;;  %111 = vmatpush.msra.mxu0 %v58_v0  ;;  %2211 = vmatpush.msra.mxu1 %v58_v0  ;;  %v2431_v4 = vld [vmem:[%s3611_s0 + $0x30] sm:$0xff]  ;;  %v2436_v5 = vld [vmem:[%s3611_s0 + $0x38] sm:$0xff]  ;;  %s2143_s16 = sshll.u32 %s2375_s15, 4  ;;  %s2144_s16 = int_to_ptr.vmem [resolvable:$true] %s2143_s16 }
   0x8   :  { %2212 = vmatpush.msra.mxu2 %v58_v0  ;;  %2213 = vmatpush.msra.mxu3 %v58_v0  ;;  %v46_v2 = vld [vmem:[%s3611_s0] sm:$0xff]  ;;  %v59_v6 = vld [vmem:[%s3612_s1 + $0x28] sm:$0xff]  ;;  %v60_v7 = vld [vmem:[%s3612_s1 + $0x30] sm:$0xff] }
   0x9   :  { %112 = vmatpush.msra.mxu0 %v54_v1  ;;  %2214 = vmatpush.msra.mxu1 %v54_v1  ;;  %v61_v8 = vld [vmem:[%s3612_s1 + $0x38] sm:$0xff]  ;;  %v2450_v9 = vld [vmem:[#allocation5 + $0x1e0] sm:$0xff]  ;;  %v55_v10 = vld [vmem:[%s3612_s1 + $0x8] sm:$0xff] }
   0xa   :  { %2215 = vmatpush.msra.mxu2 %v54_v1  ;;  %2216 = vmatpush.msra.mxu3 %v54_v1  ;;  %v56_v11 = vld [vmem:[%s3612_s1 + $0x10] sm:$0xff]  ;;  %v57_v12 = vld [vmem:[%s3612_s1 + $0x18] sm:$0xff]  ;;  %v2465_v13 = vld [vmem:[#allocation5 + $0x1e8] sm:$0xff] }
   0xb   :  { %2155 = vmatmul.msk.f32.vlgmr.msra.gmra.mxu0 %vm72_vm0, %v46_v2  ;;  %2160 = vmatmul.msk.f32.vlgmr.msra.gmra.mxu1 %vm72_vm0, %v2426_v3  ;;  %v2468_v14 = vld [vmem:[#allocation5 + $0x1c0] sm:$0xff]  ;;  %v2470_v15 = vld [vmem:[#allocation5 + $0x1f8] sm:$0xff]  ;;  %v2472_v16 = vld [vmem:[#allocation5 + $0x1c8] sm:$0xff] }
   0xc   :  { %2161 = vmatmul.msk.f32.vlgmr.msra.gmra.mxu2 %vm72_vm0, %v2431_v4  ;;  %2162 = vmatmul.msk.f32.vlgmr.msra.gmra.mxu3 %vm72_vm0, %v2436_v5  ;;  %v2474_v17 = vld [vmem:[#allocation5 + $0x1f0] sm:$0xff]  ;;  %v47_v18 = vld [vmem:[%s3611_s0 + $0x8] sm:$0xff]  ;;  %v2483_v19 = vld [vmem:[#allocation5 + $0x1a0] sm:$0xff] }
   0xd   :  { %152 = vmatpush.msrb.mxu1 %v59_v6  ;;  %193 = vmatpush.msrb.mxu2 %v60_v7  ;;  %v2485_v20 = vld [vmem:[#allocation5 + $0x1a8] sm:$0xff]  ;;  %v2490_v21 = vld [vmem:[#allocation5 + $0x1d8] sm:$0xff]  ;;  %v2492_v22 = vld [vmem:[#allocation5 + $0x1d0] sm:$0xff] }
   0xe   :  { %234 = vmatpush.msrb.mxu3 %v61_v8  ;;  %364 = vmatpush.msrb.mxu0 %v2450_v9  ;;  %v2496_v23 = vld [vmem:[#allocation5 + $0x180] sm:$0xff]  ;;  %v2498_v24 = vld [vmem:[#allocation5 + $0x188] sm:$0xff]  ;;  %v2502_v25 = vld [vmem:[#allocation5 + $0x1b8] sm:$0xff] }
   0xf   :  { %153 = vmatpush.msrb.mxu1 %v55_v10  ;;  %194 = vmatpush.msrb.mxu2 %v56_v11  ;;  %v2504_v26 = vld [vmem:[#allocation5 + $0x1b0] sm:$0xff]  ;;  %v2506_v27 = vld [vmem:[#allocation5 + $0x160] sm:$0xff]  ;;  %v2509_v28 = vld [vmem:[#allocation5 + $0x168] sm:$0xff] }
  0x10   :  { %235 = vmatpush.msrb.mxu3 %v57_v12  ;;  %365 = vmatpush.msrb.mxu0 %v2468_v14  ;;  %v2514_v29 = vld [vmem:[#allocation5 + $0x198] sm:$0xff]  ;;  %v2516_v30 = vld [vmem:[#allocation5 + $0x190] sm:$0xff]  ;;  %v2525_v32 = vld [vmem:[#allocation5 + $0x140] sm:$0xff] }
  0x11   :  { %384 = vmatpush.msra.mxu1 %v2465_v13  ;;  %404 = vmatpush.msra.mxu2 %v2474_v17  ;;  %v48_v31 = vld [vmem:[%s3611_s0 + $0x10] sm:$0xff]  ;;  %v2528_v33 = vld [vmem:[#allocation5 + $0x148] sm:$0xff]  ;;  %v2533_v34 = vld [vmem:[#allocation5 + $0x178] sm:$0xff] }
  0x12   :  { %424 = vmatpush.msra.mxu3 %v2470_v15  ;;  %366 = vmatpush.msrb.mxu0 %v2483_v19  ;;  %v2535_v35 = vld [vmem:[#allocation5 + $0x170] sm:$0xff]  ;;  %v2539_v36 = vld [vmem:[#allocation5 + $0x120] sm:$0xff]  ;;  %v2541_v37 = vld [vmem:[#allocation5 + $0x128] sm:$0xff] }
  0x13   :  { %385 = vmatpush.msra.mxu1 %v2472_v16  ;;  %2156 = vmatmul.msk.f32.gmra.mxu0 %vm72_vm0, %v47_v18  ;;  %v2545_v38 = vld [vmem:[#allocation5 + $0x158] sm:$0xff]  ;;  %v2547_v39 = vld [vmem:[#allocation5 + $0x150] sm:$0xff]  ;;  %v2549_v40 = vld [vmem:[#allocation5 + $0x100] sm:$0xff] }
  0x14   :  { %2163 = vmatmul.msk.f32.vlgmr.msrb.gmra.mxu1 %vm72_vm0, %v46_v2  ;;  %2171 = vmatmul.msk.f32.vlgmr.msrb.gmra.mxu2 %vm72_vm0, %v46_v2  ;;  %v2552_v41 = vld [vmem:[#allocation5 + $0x108] sm:$0xff]  ;;  %v2557_v42 = vld [vmem:[#allocation5 + $0x138] sm:$0xff]  ;;  %v2559_v43 = vld [vmem:[#allocation5 + $0x130] sm:$0xff] }
  0x15   :  { %2179 = vmatmul.msk.f32.vlgmr.msrb.gmra.mxu3 %vm72_vm0, %v46_v2  ;;  %386 = vmatpush.msra.mxu1 %v2485_v20  ;;  %v49_v44 = vld [vmem:[%s3611_s0 + $0x18] sm:$0xff]  ;;  %v2568_v45 = vld [vmem:[#allocation5 + $0xe0] sm:$0xff]  ;;  %v2571_v46 = vld [vmem:[#allocation5 + $0xe8] sm:$0xff] }
  0x16   :  { %425 = vmatpush.msra.mxu3 %v2490_v21  ;;  %405 = vmatpush.msra.mxu2 %v2492_v22  ;;  %v2576_v47 = vld [vmem:[#allocation5 + $0x118] sm:$0xff]  ;;  %v2578_v48 = vld [vmem:[#allocation5 + $0x110] sm:$0xff]  ;;  %v2582_v49 = vld [vmem:[#allocation5 + $0xc0] sm:$0xff] }
  0x17   :  { %367 = vmatpush.msrb.mxu0 %v2496_v23  ;;  %387 = vmatpush.msra.mxu1 %v2498_v24  ;;  %v2584_v50 = vld [vmem:[#allocation5 + $0xc8] sm:$0xff]  ;;  %v2588_v51 = vld [vmem:[#allocation5 + $0xf8] sm:$0xff]  ;;  %v2590_v52 = vld [vmem:[#allocation5 + $0xf0] sm:$0xff] }
  0x18   :  { %426 = vmatpush.msra.mxu3 %v2502_v25  ;;  %406 = vmatpush.msra.mxu2 %v2504_v26  ;;  %v2592_v53 = vld [vmem:[#allocation5 + $0xa0] sm:$0xff]  ;;  %v2595_v54 = vld [vmem:[#allocation5 + $0xa8] sm:$0xff]  ;;  %v2600_v55 = vld [vmem:[#allocation5 + $0xd8] sm:$0xff] }
  0x19   :  { %368 = vmatpush.msrb.mxu0 %v2506_v27  ;;  %388 = vmatpush.msra.mxu1 %v2509_v28  ;;  %v2602_v56 = vld [vmem:[#allocation5 + $0xd0] sm:$0xff]  ;;  %v2604_v57 = vld [vmem:[#allocation5 + $0x80] sm:$0xff]  ;;  %v2619_v60 = vld [vmem:[#allocation5 + $0x88] sm:$0xff] }
  0x1a   :  { %427 = vmatpush.msra.mxu3 %v2514_v29  ;;  %407 = vmatpush.msra.mxu2 %v2516_v30  ;;  %v50_v58 = vld [vmem:[%s3611_s0 + $0x20] sm:$0xff]  ;;  %v2621_v61 = vld [vmem:[#allocation5 + $0xb8] sm:$0xff]  ;;  %v2627_v63 = vld [vmem:[#allocation5 + $0xb0] sm:$0xff] }
  0x1b   :  { %2157 = vmatmul.msk.f32.gmra.mxu0 %vm72_vm0, %v48_v31  ;;  %389 = vmatpush.msra.mxu1 %v2528_v33  ;;  %v2613_v59 = vld [vmem:[#allocation5 + $0x60] sm:$0xff]  ;;  %v2631_v0 = vld [vmem:[#allocation5 + $0x68] sm:$0xff]  ;;  %v2633_v1 = vld [vmem:[#allocation5 + $0x98] sm:$0xff] }
  0x1c   :  { %2164 = vmatmul.msk.f32.gmra.mxu1 %vm72_vm0, %v47_v18  ;;  %2172 = vmatmul.msk.f32.gmra.mxu2 %vm72_vm0, %v47_v18  ;;  %v2625_v62 = vld [vmem:[#allocation5 + $0x40] sm:$0xff]  ;;  %v2639_v6 = vld [vmem:[#allocation5 + $0x90] sm:$0xff]  ;;  %v2642_v7 = vld [vmem:[#allocation5 + $0x48] sm:$0xff] }
  0x1d   :  { %2180 = vmatmul.msk.f32.gmra.mxu3 %vm72_vm0, %v47_v18  ;;  %369 = vmatpush.msrb.mxu0 %v2525_v32  ;;  %v2635_v2 = vld [vmem:[#allocation5 + $0x20] sm:$0xff]  ;;  %3654 = vst [vmem:[#allocation12_spill] sm:$0xff] %v2642_v7  ;;  %v2645_v8 = vld [vmem:[#allocation5 + $0x78] sm:$0xff]  ;;  %v2655_v11 = vld [vmem:[#allocation5 + $0x28] sm:$0xff] }
  0x1e   :  { %428 = vmatpush.msra.mxu3 %v2533_v34  ;;  %408 = vmatpush.msra.mxu2 %v2535_v35  ;;  %3653 = vst [vmem:[#allocation11_spill] sm:$0xff] %v2635_v2  ;;  %v2647_v10 = vld [vmem:[#allocation5] sm:$0xff]  ;;  %v2659_v12 = vld [vmem:[#allocation5 + $0x70] sm:$0xff]  ;;  %v2661_v18 = vld [vmem:[#allocation5 + $0x58] sm:$0xff] }
  0x1f   :  { %370 = vmatpush.msrb.mxu0 %v2539_v36  ;;  %390 = vmatpush.msra.mxu1 %v2541_v37  ;;  %3655 = vst [vmem:[#allocation13_spill] sm:$0xff] %v2645_v8 }
  0x20   :  { %429 = vmatpush.msra.mxu3 %v2545_v38  ;;  %409 = vmatpush.msra.mxu2 %v2547_v39  ;;  %3656 = vst [vmem:[#allocation14_spill] sm:$0xff] %v2647_v10 }
  0x21   :  { %371 = vmatpush.msrb.mxu0 %v2549_v40  ;;  %391 = vmatpush.msra.mxu1 %v2552_v41 }
  0x22   :  { %430 = vmatpush.msra.mxu3 %v2557_v42  ;;  %410 = vmatpush.msra.mxu2 %v2559_v43 }
  0x23   :  { %2158 = vmatmul.msk.f32.gmra.mxu0 %vm72_vm0, %v49_v44  ;;  %392 = vmatpush.msra.mxu1 %v2571_v46 }
  0x24   :  { %2165 = vmatmul.msk.f32.gmra.mxu1 %vm72_vm0, %v48_v31  ;;  %2173 = vmatmul.msk.f32.gmra.mxu2 %vm72_vm0, %v48_v31 }
  0x25   :  { %2181 = vmatmul.msk.f32.gmra.mxu3 %vm72_vm0, %v48_v31  ;;  %372 = vmatpush.msrb.mxu0 %v2568_v45  ;;  %v2374_v31 = vmov 0.0  }
  0x26   :  { %431 = vmatpush.msra.mxu3 %v2576_v47  ;;  %411 = vmatpush.msra.mxu2 %v2578_v48 }
  0x27   :  { %373 = vmatpush.msrb.mxu0 %v2582_v49  ;;  %393 = vmatpush.msra.mxu1 %v2584_v50 }
  0x28   :  { %432 = vmatpush.msra.mxu3 %v2588_v51  ;;  %412 = vmatpush.msra.mxu2 %v2590_v52 }
  0x29   :  { %374 = vmatpush.msrb.mxu0 %v2592_v53  ;;  %394 = vmatpush.msra.mxu1 %v2595_v54 }
  0x2a   :  { %433 = vmatpush.msra.mxu3 %v2600_v55  ;;  %413 = vmatpush.msra.mxu2 %v2602_v56 }
  0x2b   :  { %375 = vmatpush.msrb.mxu0 %v2604_v57  ;;  %395 = vmatpush.msra.mxu1 %v2619_v60 }
  0x2c   :  { %2166 = vmatmul.msk.f32.gmra.mxu1 %vm72_vm0, %v49_v44  ;;  %2159 = vmatmul.msk.f32.gmra.mxu0 %vm72_vm0, %v50_v58 }
  0x2d   :  { %2174 = vmatmul.msk.f32.gmra.mxu2 %vm72_vm0, %v49_v44  ;;  %2182 = vmatmul.msk.f32.gmra.mxu3 %vm72_vm0, %v49_v44  ;;  %v2665_v44 = vld [vmem:[#allocation5 + $0x8] sm:$0xff] }
  0x2e   :  { %376 = vmatpush.msrb.mxu0 %v2613_v59  ;;  %434 = vmatpush.msra.mxu3 %v2621_v61 }
  0x2f   :  { %414 = vmatpush.msra.mxu2 %v2627_v63  ;;  %396 = vmatpush.msra.mxu1 %v2631_v0 }
  0x30   :  { %377 = vmatpush.msrb.mxu0 %v2625_v62  ;;  %435 = vmatpush.msra.mxu3 %v2633_v1 }
  0x31   :  { %415 = vmatpush.msra.mxu2 %v2639_v6  ;;  %397 = vmatpush.msra.mxu1 %v2642_v7  ;;  %v2676_v7 = vld [vmem:[#allocation5 + $0x30] sm:$0xff] }
  0x32   :  { %378 = vmatpush.msrb.mxu0 %v2635_v2  ;;  %436 = vmatpush.msra.mxu3 %v2645_v8  ;;  %v2669_v2 = vld [vmem:[#allocation5 + $0x50] sm:$0xff]  ;;  %v2678_v8 = vld [vmem:[#allocation5 + $0x18] sm:$0xff] }
  0x33   :  { %398 = vmatpush.msra.mxu1 %v2655_v11  ;;  %416 = vmatpush.msra.mxu2 %v2659_v12 }
  0x34   :  { %379 = vmatpush.msrb.mxu0 %v2647_v10  ;;  %2167 = vmatmul.msk.f32.gmra.mxu1 %vm72_vm0, %v50_v58  ;;  %v2671_v10 = vld [vmem:[#allocation5 + $0x38] sm:$0xff] }
  0x35   :  { %2175 = vmatmul.msk.f32.gmra.mxu2 %vm72_vm0, %v50_v58  ;;  %380 = vmatmul.f32.vlgmr.msrb.gmra.mxu0 %v2374_v31 }
  0x36   :  { %2183 = vmatmul.msk.f32.gmra.mxu3 %vm72_vm0, %v50_v58  ;;  %399 = vmatpush.msra.mxu1 %v2665_v44  ;;  %v2686_v58 = vld [vmem:[#allocation5 + $0x10] sm:$0xff] }
  0x37   :  { %437 = vmatpush.msra.mxu3 %v2661_v18  ;;  %588 = vmatpush.msra.mxu0 %v2450_v9 }
  0x38   :  { %417 = vmatpush.msra.mxu2 %v2669_v2  ;;  %608 = vmatpush.msrb.mxu1 %v2465_v13 }
  0x39   :  { %438 = vmatpush.msra.mxu3 %v2671_v10  ;;  %589 = vmatpush.msra.mxu0 %v2468_v14 }
  0x3a   :  { %418 = vmatpush.msra.mxu2 %v2676_v7  ;;  %609 = vmatpush.msrb.mxu1 %v2472_v16 }
  0x3b   :  { %439 = vmatpush.msra.mxu3 %v2678_v8  ;;  %590 = vmatpush.msra.mxu0 %v2483_v19 }
  0x3c   :  { %2168 = vmatmul.msk.f32.gmra.mxu1 %vm72_vm0, %v2426_v3  ;;  %419 = vmatpush.msra.mxu2 %v2686_v58 }
  0x3d   :  { %648 = vmatpush.msrb.mxu3 %v2470_v15  ;;  %2176 = vmatmul.msk.f32.gmra.mxu2 %vm72_vm0, %v2426_v3 }
  0x3e   :  { %2184 = vmatmul.msk.f32.gmra.mxu3 %vm72_vm0, %v2426_v3  ;;  %628 = vmatpush.msrb.mxu2 %v2474_v17  ;;  %v3657_v3 = vld [vmem:[#allocation13_spill] sm:$0xff] }
  0x3f   :  { %649 = vmatpush.msrb.mxu3 %v2490_v21  ;;  %610 = vmatpush.msrb.mxu1 %v2485_v20 }
  0x40   :  { %629 = vmatpush.msrb.mxu2 %v2492_v22  ;;  %591 = vmatpush.msra.mxu0 %v2496_v23 }
  0x41   :  { %650 = vmatpush.msrb.mxu3 %v2502_v25  ;;  %611 = vmatpush.msrb.mxu1 %v2498_v24 }
  0x42   :  { %630 = vmatpush.msrb.mxu2 %v2504_v26  ;;  %592 = vmatpush.msra.mxu0 %v2506_v27 }
  0x43   :  { %651 = vmatpush.msrb.mxu3 %v2514_v29  ;;  %612 = vmatpush.msrb.mxu1 %v2509_v28 }
  0x44   :  { %2169 = vmatmul.msk.f32.gmra.mxu1 %vm72_vm0, %v2431_v4  ;;  %631 = vmatpush.msrb.mxu2 %v2516_v30 }
  0x45   :  { %2177 = vmatmul.msk.f32.gmra.mxu2 %vm72_vm0, %v2431_v4  ;;  %652 = vmatpush.msrb.mxu3 %v2533_v34 }
  0x46   :  { %2185 = vmatmul.msk.f32.gmra.mxu3 %vm72_vm0, %v2431_v4  ;;  %593 = vmatpush.msra.mxu0 %v2525_v32  ;;  %v3658_v4 = vld [vmem:[#allocation12_spill] sm:$0xff] }
  0x47   :  { %632 = vmatpush.msrb.mxu2 %v2535_v35  ;;  %613 = vmatpush.msrb.mxu1 %v2528_v33 }
  0x48   :  { %653 = vmatpush.msrb.mxu3 %v2545_v38  ;;  %594 = vmatpush.msra.mxu0 %v2539_v36 }
  0x49   :  { %633 = vmatpush.msrb.mxu2 %v2547_v39  ;;  %614 = vmatpush.msrb.mxu1 %v2541_v37 }
  0x4a   :  { %654 = vmatpush.msrb.mxu3 %v2557_v42  ;;  %595 = vmatpush.msra.mxu0 %v2549_v40 }
  0x4b   :  { %634 = vmatpush.msrb.mxu2 %v2559_v43  ;;  %615 = vmatpush.msrb.mxu1 %v2552_v41 }
  0x4c   :  { %2170 = vmatmul.msk.f32.gmra.mxu1 %vm72_vm0, %v2436_v5  ;;  %655 = vmatpush.msrb.mxu3 %v2576_v47 }
  0x4d   :  { %2178 = vmatmul.msk.f32.gmra.mxu2 %vm72_vm0, %v2436_v5  ;;  %596 = vmatpush.msra.mxu0 %v2568_v45 }
  0x4e   :  { %2186 = vmatmul.msk.f32.gmra.mxu3 %vm72_vm0, %v2436_v5  ;;  %635 = vmatpush.msrb.mxu2 %v2578_v48  ;;  %v3659_v5 = vld [vmem:[#allocation11_spill] sm:$0xff] }
  0x4f   :  { %616 = vmatpush.msrb.mxu1 %v2571_v46  ;;  %656 = vmatpush.msrb.mxu3 %v2588_v51 }
  0x50   :  { %636 = vmatpush.msrb.mxu2 %v2590_v52  ;;  %597 = vmatpush.msra.mxu0 %v2582_v49 }
  0x51   :  { %617 = vmatpush.msrb.mxu1 %v2584_v50  ;;  %657 = vmatpush.msrb.mxu3 %v2600_v55 }
  0x52   :  { %637 = vmatpush.msrb.mxu2 %v2602_v56  ;;  %598 = vmatpush.msra.mxu0 %v2592_v53 }
  0x53   :  { %618 = vmatpush.msrb.mxu1 %v2595_v54  ;;  %658 = vmatpush.msrb.mxu3 %v2621_v61 }
  0x54   :  { %400 = vmatmul.f32.vlgmr.msra.gmra.mxu1 %v2374_v31  ;;  %638 = vmatpush.msrb.mxu2 %v2627_v63 }
  0x55   :  { %420 = vmatmul.f32.vlgmr.msra.gmra.mxu2 %v2374_v31  ;;  %599 = vmatpush.msra.mxu0 %v2604_v57 }
  0x56   :  { %440 = vmatmul.f32.vlgmr.msra.gmra.mxu3 %v2374_v31  ;;  %619 = vmatpush.msrb.mxu1 %v2619_v60  ;;  %v3660_v31 = vld [vmem:[#allocation14_spill] sm:$0xff] }
  0x57   :  { %639 = vmatpush.msrb.mxu2 %v2639_v6  ;;  %600 = vmatpush.msra.mxu0 %v2613_v59 }
  0x58   :  { %659 = vmatpush.msrb.mxu3 %v2633_v1  ;;  %620 = vmatpush.msrb.mxu1 %v2631_v0 }
  0x59   :  { %640 = vmatpush.msrb.mxu2 %v2659_v12  ;;  %601 = vmatpush.msra.mxu0 %v2625_v62 }
  0x5a   :  { %660 = vmatpush.msrb.mxu3 %v3657_v3  ;;  %621 = vmatpush.msrb.mxu1 %v3658_v4 }
  0x5b   :  { %641 = vmatpush.msrb.mxu2 %v2669_v2  ;;  %602 = vmatpush.msra.mxu0 %v3659_v5 }
  0x5c   :  { %661 = vmatpush.msrb.mxu3 %v2661_v18  ;;  %622 = vmatpush.msrb.mxu1 %v2655_v11 }
  0x5d   :  { %642 = vmatpush.msrb.mxu2 %v2676_v7  ;;  %603 = vmatpush.msra.mxu0 %v3660_v31 }
  0x5e   :  { %662 = vmatpush.msrb.mxu3 %v2671_v10  ;;  %623 = vmatpush.msrb.mxu1 %v2665_v44 }
  0x5f   :  { %643 = vmatpush.msrb.mxu2 %v2686_v58  ;;  %813 = vmatpush.msrb.mxu0 %v2450_v9  ;;  %v62_v9 = vld [vmem:[%s3614_s3] sm:$0xf] }
  0x60   :  { %663 = vmatpush.msrb.mxu3 %v2678_v8  ;;  %833 = vmatpush.msra.mxu1 %v2465_v13  ;;  %v64_v13 = vperm.slane %v62_v9, 0 }
  0x61   :  { %853 = vmatpush.msra.mxu2 %v2474_v17  ;;  %814 = vmatpush.msrb.mxu0 %v2468_v14 }
  0x62   :  { %873 = vmatpush.msra.mxu3 %v2470_v15  ;;  %834 = vmatpush.msra.mxu1 %v2472_v16 }
  0x63   :  { %854 = vmatpush.msra.mxu2 %v2492_v22  ;;  %815 = vmatpush.msrb.mxu0 %v2483_v19 }
  0x64   :  { %874 = vmatpush.msra.mxu3 %v2490_v21  ;;  %835 = vmatpush.msra.mxu1 %v2485_v20 }
  0x65   :  { %855 = vmatpush.msra.mxu2 %v2504_v26  ;;  %816 = vmatpush.msrb.mxu0 %v2496_v23  ;;  %v65_v23 = vperm.slane %v62_v9, 1 }
  0x66   :  { %875 = vmatpush.msra.mxu3 %v2502_v25  ;;  %836 = vmatpush.msra.mxu1 %v2498_v24 }
  0x67   :  { %856 = vmatpush.msra.mxu2 %v2516_v30  ;;  %817 = vmatpush.msrb.mxu0 %v2506_v27  ;;  %v2849_v30 = vperm.slane %v62_v9, 2 }
  0x68   :  { %876 = vmatpush.msra.mxu3 %v2514_v29  ;;  %837 = vmatpush.msra.mxu1 %v2509_v28 }
  0x69   :  { %857 = vmatpush.msra.mxu2 %v2535_v35  ;;  %818 = vmatpush.msrb.mxu0 %v2525_v32  ;;  %v67_v32 = vperm.slane %v62_v9, 3 }
  0x6a   :  { %877 = vmatpush.msra.mxu3 %v2533_v34  ;;  %838 = vmatpush.msra.mxu1 %v2528_v33 }
  0x6b   :  { %858 = vmatpush.msra.mxu2 %v2547_v39  ;;  %819 = vmatpush.msrb.mxu0 %v2539_v36 }
  0x6c   :  { %878 = vmatpush.msra.mxu3 %v2545_v38  ;;  %839 = vmatpush.msra.mxu1 %v2541_v37 }
  0x6d   :  { %859 = vmatpush.msra.mxu2 %v2559_v43  ;;  %820 = vmatpush.msrb.mxu0 %v2549_v40 }
  0x6e   :  { %879 = vmatpush.msra.mxu3 %v2557_v42  ;;  %840 = vmatpush.msra.mxu1 %v2552_v41 }
  0x6f   :  { %860 = vmatpush.msra.mxu2 %v2578_v48  ;;  %821 = vmatpush.msrb.mxu0 %v2568_v45 }
  0x70   :  { %880 = vmatpush.msra.mxu3 %v2576_v47  ;;  %841 = vmatpush.msra.mxu1 %v2571_v46 }
  0x71   :  { %861 = vmatpush.msra.mxu2 %v2590_v52  ;;  %822 = vmatpush.msrb.mxu0 %v2582_v49 }
  0x72   :  { %881 = vmatpush.msra.mxu3 %v2588_v51  ;;  %842 = vmatpush.msra.mxu1 %v2584_v50 }
  0x73   :  { %862 = vmatpush.msra.mxu2 %v2602_v56  ;;  %823 = vmatpush.msrb.mxu0 %v2592_v53 }
  0x74   :  { %882 = vmatpush.msra.mxu3 %v2600_v55  ;;  %843 = vmatpush.msra.mxu1 %v2595_v54 }
  0x75   :  { %863 = vmatpush.msra.mxu2 %v2627_v63  ;;  %824 = vmatpush.msrb.mxu0 %v2604_v57 }
  0x76   :  { %883 = vmatpush.msra.mxu3 %v2621_v61  ;;  %844 = vmatpush.msra.mxu1 %v2619_v60 }
  0x77   :  { %864 = vmatpush.msra.mxu2 %v2639_v6  ;;  %825 = vmatpush.msrb.mxu0 %v2613_v59 }
  0x78   :  { %884 = vmatpush.msra.mxu3 %v2633_v1  ;;  %845 = vmatpush.msra.mxu1 %v2631_v0 }
  0x79   :  { %865 = vmatpush.msra.mxu2 %v2659_v12  ;;  %826 = vmatpush.msrb.mxu0 %v2625_v62 }
  0x7a   :  { %885 = vmatpush.msra.mxu3 %v3657_v3  ;;  %846 = vmatpush.msra.mxu1 %v3658_v4 }
  0x7b   :  { %866 = vmatpush.msra.mxu2 %v2669_v2  ;;  %827 = vmatpush.msrb.mxu0 %v3659_v5 }
  0x7c   :  { %886 = vmatpush.msra.mxu3 %v2661_v18  ;;  %847 = vmatpush.msra.mxu1 %v2655_v11 }
  0x7d   :  { %867 = vmatpush.msra.mxu2 %v2676_v7  ;;  %828 = vmatpush.msrb.mxu0 %v3660_v31 }
  0x7e   :  { %887 = vmatpush.msra.mxu3 %v2671_v10  ;;  %848 = vmatpush.msra.mxu1 %v2665_v44 }
  0x7f   :  { %868 = vmatpush.msra.mxu2 %v2686_v58 }
  0x80   :  { %888 = vmatpush.msra.mxu3 %v2678_v8 }
  0x88   :  { %v114_v14 = vpop.f32.mrf.mxu0  ;;  %v129_v15 = vpop.f32.mrf.mxu1 }
  0x89   :  { %v2839_v16 = vadd.f32 %v129_v15, %v64_v13  ;;  %v115_v0 = vadd.f32 %v114_v14, %v64_v13 }
  0x8b   :  { %3661 = vst [vmem:[#allocation13_spill] sm:$0xff] %v2839_v16  ;;  %v3045_v16 = vld [vmem:[#allocation5 + $0x60] sm:$0xff] }
  0x8c   :  { %3686 = vst [vmem:[#allocation36_spill] sm:$0xff] %v3045_v16 }
  0x8f   :  { %v132_v17 = vpop.f32.mrf.mxu2  ;;  %v135_v19 = vpop.f32.mrf.mxu3 }
  0x90   :  { %v117_v20 = vpop.f32.mrf.mxu0 }
  0x91   :  { %v155_v21 = vpop.f32.mrf.mxu1  ;;  %v2841_v22 = vadd.f32 %v117_v20, %v64_v13 }
  0x92   :  { %v156_v4 = vadd.f32 %v155_v21, %v65_v23 }
  0x97   :  { %v2843_v24 = vpop.f32.mrf.mxu2 }
  0x98   :  { %v237_v25 = vpop.f32.mrf.mxu3  ;;  %v120_v26 = vpop.f32.mrf.mxu0  ;;  %v197_v21 = vadd.f32 %v2843_v24, %v2849_v30 }
  0x99   :  { %v158_v27 = vpop.f32.mrf.mxu1  ;;  %v2845_v28 = vadd.f32 %v120_v26, %v64_v13  ;;  %v238_v15 = vadd.f32 %v237_v25, %v67_v32 }
  0x9a   :  { %v2847_v29 = vadd.f32 %v158_v27, %v65_v23 }
  0x9f   :  { %v199_v33 = vpop.f32.mrf.mxu2 }
  0xa0   :  { %v240_v34 = vpop.f32.mrf.mxu3  ;;  %v2852_v35 = vadd.f32 %v199_v33, %v2849_v30  ;;  %v123_v37 = vpop.f32.mrf.mxu0 }
  0xa1   :  { %v2854_v36 = vadd.f32 %v240_v34, %v67_v32  ;;  %v161_v38 = vpop.f32.mrf.mxu1  ;;  %v2856_v39 = vadd.f32 %v123_v37, %v64_v13 }
  0xa2   :  { %v2858_v40 = vadd.f32 %v161_v38, %v65_v23 }
  0xa3   :  { %3662 = vst [vmem:[#allocation12_spill] sm:$0xff] %v2856_v39  ;;  %v3074_v39 = vld [vmem:[#allocation5 + $0x30] sm:$0xff] }
  0xa7   :  { %v202_v41 = vpop.f32.mrf.mxu2 }
  0xa8   :  { %v243_v42 = vpop.f32.mrf.mxu3  ;;  %v2861_v43 = vadd.f32 %v202_v41, %v2849_v30 }
  0xa9   :  { %v2863_v45 = vadd.f32 %v243_v42, %v67_v32  ;;  %v164_v46 = vpop.f32.mrf.mxu1  ;;  %v126_v47 = vpop.f32.mrf.mxu0 }
  0xaa   :  { %v2865_v48 = vadd.f32 %v164_v46, %v65_v23  ;;  %v2867_v49 = vadd.f32 %v126_v47, %v64_v13 }
  0xac   :  { %3663 = vst [vmem:[#allocation11_spill] sm:$0xff] %v2865_v48 }
  0xad   :  { %3664 = vst [vmem:[#allocation14_spill] sm:$0xff] %v2867_v49 }
  0xb0   :  { %v205_v50 = vpop.f32.mrf.mxu2  ;;  %v246_v52 = vpop.f32.mrf.mxu3 }
  0xb1   :  { %v2870_v51 = vadd.f32 %v205_v50, %v2849_v30  ;;  %v167_v53 = vpop.f32.mrf.mxu1  ;;  %v2872_v54 = vadd.f32 %v246_v52, %v67_v32 }
  0xb2   :  { %v2874_v55 = vadd.f32 %v167_v53, %v65_v23  ;;  %v381_v63 = vpop.f32.mrf.mxu0 }
  0xb3   :  { %3665 = vst [vmem:[#allocation15_spill] sm:$0xff] %v2870_v51  ;;  %v444_v1 = vadd.f32 %v381_v63, %v115_v0  ;;  %v3065_v51 = vld [vmem:[#allocation5 + $0x58] sm:$0xff] }
  0xb4   :  { %3666 = vst [vmem:[#allocation16_spill] sm:$0xff] %v2872_v54  ;;  %v3067_v54 = vld [vmem:[#allocation5 + $0x20] sm:$0xff] }
  0xb5   :  { %3667 = vst [vmem:[#allocation17_spill] sm:$0xff] %v2874_v55  ;;  %v2187_v10 = vmul.f32 -1.442695, %v444_v1  ;;  %v3059_v55 = vld [vmem:[#allocation5 + $0x48] sm:$0xff] }
  0xb6   :  { %3690 = vst [vmem:[#allocation40_spill] sm:$0xff] %v3059_v55 }
  0xb7   :  { %2223 = vpow2.f32 %v2187_v10  ;;  %3692 = vst [vmem:[#allocation42_spill] sm:$0xff] %v3065_v51 }
  0xb8   :  { %v208_v56 = vpop.f32.mrf.mxu2 }
  0xb9   :  { %v2877_v57 = vadd.f32 %v208_v56, %v2849_v30  ;;  %v249_v59 = vpop.f32.mrf.mxu3  ;;  %v170_v60 = vpop.f32.mrf.mxu1 }
  0xba   :  { %v2879_v61 = vadd.f32 %v249_v59, %v67_v32  ;;  %v2881_v62 = vadd.f32 %v170_v60, %v65_v23 }
  0xbb   :  { %3668 = vst [vmem:[#allocation18_spill] sm:$0xff] %v2877_v57  ;;  %v3053_v57 = vld [vmem:[#allocation5 + $0x78] sm:$0xff] }
  0xbc   :  { %3669 = vst [vmem:[#allocation19_spill] sm:$0xff] %v2879_v61  ;;  %v3057_v61 = vld [vmem:[#allocation5 + $0x40] sm:$0xff] }
  0xbd   :  { %3670 = vst [vmem:[#allocation20_spill] sm:$0xff] %v2881_v62  ;;  %v2224_v58 = vpop.eup %2223  ;;  %v3043_v62 = vld [vmem:[#allocation5 + $0x98] sm:$0xff] }
  0xbe   :  { %v451_v3 = vadd.f32 1.0, %v2224_v58  ;;  %3689 = vst [vmem:[#allocation39_spill] sm:$0xff] %v3053_v57 }
  0xc0   :  { %v211_v2 = vpop.f32.mrf.mxu2  ;;  %2225 = vrcp.f32 %v451_v3  ;;  %vm457_vm2 = vweird.f32 %v451_v3  ;;  %v463_v53 = vand.u32 2147483648, %v451_v3  ;;  %v461_v59 = vand.u32 2147483647, %v451_v3 }
  0xc1   :  { %v2884_v6 = vadd.f32 %v211_v2, %v2849_v30  ;;  %v252_v7 = vpop.f32.mrf.mxu3  ;;  %v173_v8 = vpop.f32.mrf.mxu1 }
  0xc2   :  { %v2886_v11 = vadd.f32 %v252_v7, %v67_v32  ;;  %v464_v2 = vor.u32 1.1754944e-38, %v463_v53  ;;  %vm462_vm7 = vcmp.eq.f32.partialorder %v461_v59, 8.507059e+37 }
  0xc3   :  { %3671 = vst [vmem:[#allocation21_spill] sm:$0xff] %v2884_v6  ;;  %v3031_v6 = vld [vmem:[#allocation5 + $0xb8] sm:$0xff] }
  0xc4   :  { %3672 = vst [vmem:[#allocation22_spill] sm:$0xff] %v2886_v11 }
  0xc6   :  { %v2226_v17 = vpop.eup %2225 }
  0xc7   :  { %v453_v27 = vmul.f32 %v2226_v17, %v451_v3  ;;  %vm458_vm1 = vweird.f32 %v2226_v17 }
  0xc8   :  { %v214_v12 = vpop.f32.mrf.mxu2  ;;  %vm459_vm4 = vmor %vm457_vm2, %vm458_vm1 }
  0xc9   :  { %v255_v18 = vpop.f32.mrf.mxu3  ;;  %v176_v44 = vpop.f32.mrf.mxu1  ;;  %v454_v23 = vsub.f32 1.0, %v453_v27 }
  0xcb   :  { %v455_v42 = vmul.f32 %v2226_v17, %v454_v23 }
  0xcd   :  { %v456_v50 = vadd.f32 %v2226_v17, %v455_v42 }
  0xcf   :  { %v460_v30 = vsel %vm459_vm4, %v2226_v17, %v456_v50 }
  0xd0   :  { %v217_v5 = vpop.f32.mrf.mxu2  ;;  %v465_v10 = vsel %vm462_vm7, %v464_v2, %v460_v30 }
  0xd1   :  { %v258_v31 = vpop.f32.mrf.mxu3  ;;  %v401_v9 = vpop.f32.mrf.mxu1 }
  0xd2   :  { %v445_v13 = vadd.f32 %v401_v9, %v156_v4 }
  0xd4   :  { %v2188_v14 = vmul.f32 -1.442695, %v445_v13 }
  0xd6   :  { %2227 = vpow2.f32 %v2188_v14 }
  0xd8   :  { %v421_v37 = vpop.f32.mrf.mxu2 }
  0xd9   :  { %v441_v19 = vpop.f32.mrf.mxu3  ;;  %v446_v38 = vadd.f32 %v421_v37, %v197_v21 }
  0xda   :  { %v447_v20 = vadd.f32 %v441_v19, %v238_v15 }
  0xdc   :  { %v2228_v26 = vpop.eup %2227  ;;  %v2189_v33 = vmul.f32 -1.442695, %v447_v20 }
  0xdd   :  { %v470_v34 = vadd.f32 1.0, %v2228_v26 }
  0xde   :  { %2229 = vpow2.f32 %v2189_v33 }
  0xdf   :  { %2231 = vrcp.f32 %v470_v34  ;;  %v482_v52 = vand.u32 2147483648, %v470_v34  ;;  %v480_v60 = vand.u32 2147483647, %v470_v34  ;;  %vm476_vm5 = vweird.f32 %v470_v34 }
  0xe0   :  { %2233 = vtanh.f32 %v446_v38 }
  0xe1   :  { %v483_v1 = vor.u32 1.1754944e-38, %v482_v52  ;;  %vm481_vm8 = vcmp.eq.f32.partialorder %v480_v60, 8.507059e+37 }
  0xe4   :  { %v2230_v41 = vpop.eup %2229 }
  0xe5   :  { %v2232_v46 = vpop.eup %2231  ;;  %v490_v47 = vadd.f32 1.0, %v2230_v41 }
  0xe6   :  { %v472_v25 = vmul.f32 %v2232_v46, %v470_v34  ;;  %vm477_vm3 = vweird.f32 %v2232_v46  ;;  %v2234_v24 = vpop.eup %2233 }
  0xe7   :  { %2235 = vrcp.f32 %v490_v47  ;;  %vm478_vm6 = vmor %vm476_vm5, %vm477_vm3  ;;  %v507_v44 = vmul.f32 %v2234_v24, %v465_v10  ;;  %v502_v31 = vand.u32 2147483648, %v490_v47  ;;  %vm496_vm10 = vweird.f32 %v490_v47 }
  0xe8   :  { %v473_v32 = vsub.f32 1.0, %v472_v25  ;;  %v500_v9 = vand.u32 2147483647, %v490_v47 }
  0xe9   :  { %v503_v14 = vor.u32 1.1754944e-38, %v502_v31 }
  0xea   :  { %v474_v56 = vmul.f32 %v2232_v46, %v473_v32  ;;  %vm501_vm12 = vcmp.eq.f32.partialorder %v500_v9, 8.507059e+37 }
  0xec   :  { %v475_v63 = vadd.f32 %v2232_v46, %v474_v56 }
  0xed   :  { %v2236_v0 = vpop.eup %2235 }
  0xee   :  { %v479_v7 = vsel %vm478_vm6, %v2232_v46, %v475_v63  ;;  %v492_v8 = vmul.f32 %v2236_v0, %v490_v47  ;;  %vm497_vm9 = vweird.f32 %v2236_v0 }
  0xef   :  { %v484_v12 = vsel %vm481_vm8, %v483_v1, %v479_v7  ;;  %vm498_vm11 = vmor %vm496_vm10, %vm497_vm9 }
  0xf0   :  { %v506_v18 = vmul.f32 0.0, %v484_v12  ;;  %v493_v58 = vsub.f32 1.0, %v492_v8 }
  0xf2   :  { %v2890_v3 = vadd.f32 %v507_v44, %v506_v18  ;;  %v494_v4 = vmul.f32 %v2236_v0, %v493_v58 }
  0xf4   :  { %2237 = vtanh.f32 %v2890_v3  ;;  %v495_v5 = vadd.f32 %v2236_v0, %v494_v4 }
  0xf6   :  { %v499_v13 = vsel %vm498_vm11, %v2236_v0, %v495_v5 }
  0xf7   :  { %v504_v17 = vsel %vm501_vm12, %v503_v14, %v499_v13 }
  0xfa   :  { %v2238_v15 = vpop.eup %2237 }
  0xfb   :  { %v510_v19 = vmul.f32 %v2238_v15, %v504_v17 }
  0xfd   :  { %604 = vmatmul.f32.vlgmr.msra.gmra.mxu0 %v510_v19  ;;  %624 = vmatmul.f32.vlgmr.msrb.gmra.mxu1 %v510_v19 }
  0xfe   :  { %644 = vmatmul.f32.vlgmr.msrb.gmra.mxu2 %v510_v19  ;;  %664 = vmatmul.f32.vlgmr.msrb.gmra.mxu3 %v510_v19 }
 0x17a   :  { %v605_v20 = vpop.f32.mrf.mxu0  ;;  %v625_v26 = vpop.f32.mrf.mxu1 }
 0x17b   :  { %v668_v27 = vadd.f32 %v605_v20, %v2841_v22  ;;  %v669_v33 = vadd.f32 %v625_v26, %v2847_v29 }
 0x17d   :  { %v2190_v34 = vmul.f32 -1.442695, %v668_v27  ;;  %v2191_v37 = vmul.f32 -1.442695, %v669_v33 }
 0x17f   :  { %2239 = vpow2.f32 %v2190_v34 }
 0x180   :  { %2241 = vpow2.f32 %v2191_v37 }
 0x181   :  { %v665_v21 = vpop.f32.mrf.mxu3  ;;  %v645_v25 = vpop.f32.mrf.mxu2 }
 0x182   :  { %v671_v23 = vadd.f32 %v665_v21, %v2854_v36  ;;  %v670_v29 = vadd.f32 %v645_v25, %v2852_v35  ;;  %v2903_v21 = vld [vmem:[#allocation5 + $0x1e8] sm:$0xff]  ;;  %v2925_v25 = vld [vmem:[#allocation5 + $0x1a0] sm:$0xff] }
 0x183   :  { %1058 = vmatpush.msrb.mxu1 %v2903_v21 }
 0x184   :  { %v2192_v38 = vmul.f32 -1.442695, %v671_v23  ;;  %v2905_v23 = vld [vmem:[#allocation5 + $0x1f0] sm:$0xff] }
 0x185   :  { %v2240_v41 = vpop.eup %2239  ;;  %1078 = vmatpush.msrb.mxu2 %v2905_v23 }
 0x186   :  { %v2242_v42 = vpop.eup %2241  ;;  %v675_v46 = vadd.f32 1.0, %v2240_v41  ;;  %2243 = vpow2.f32 %v2192_v38  ;;  %v2909_v38 = vld [vmem:[#allocation5 + $0x1f8] sm:$0xff]  ;;  %v2913_v41 = vld [vmem:[#allocation5 + $0x1c0] sm:$0xff] }
 0x187   :  { %v694_v47 = vadd.f32 1.0, %v2242_v42  ;;  %3673 = vst [vmem:[#allocation23_spill] sm:$0xff] %v2909_v38  ;;  %1098 = vmatpush.msrb.mxu3 %v2909_v38  ;;  %v2915_v42 = vld [vmem:[#allocation5 + $0x1c8] sm:$0xff] }
 0x188   :  { %2245 = vrcp.f32 %v675_v46  ;;  %v687_v60 = vand.u32 2147483648, %v675_v46  ;;  %v685_v63 = vand.u32 2147483647, %v675_v46  ;;  %vm681_vm15 = vweird.f32 %v675_v46  ;;  %3674 = vst [vmem:[#allocation24_spill] sm:$0xff] %v2913_v41  ;;  %1059 = vmatpush.msrb.mxu1 %v2915_v42 }
 0x189   :  { %2247 = vrcp.f32 %v694_v47  ;;  %v706_v24 = vand.u32 2147483648, %v694_v47  ;;  %v704_v1 = vand.u32 2147483647, %v694_v47  ;;  %vm700_vm0 = vweird.f32 %v694_v47 }
 0x18a   :  { %v688_v35 = vor.u32 1.1754944e-38, %v687_v60  ;;  %vm686_vm3 = vcmp.eq.f32.partialorder %v685_v63, 8.507059e+37  ;;  %v2953_v60 = vld [vmem:[#allocation5 + $0x170] sm:$0xff]  ;;  %v2963_v63 = vld [vmem:[#allocation5 + $0x148] sm:$0xff] }
 0x18b   :  { %v707_v12 = vor.u32 1.1754944e-38, %v706_v24  ;;  %vm705_vm4 = vcmp.eq.f32.partialorder %v704_v1, 8.507059e+37  ;;  %v2957_v24 = vld [vmem:[#allocation5 + $0x178] sm:$0xff]  ;;  %3681 = vst [vmem:[#allocation31_spill] sm:$0xff] %v2963_v63 }
 0x18c   :  { %v2244_v32 = vpop.eup %2243  ;;  %v2969_v1 = vld [vmem:[#allocation5 + $0x158] sm:$0xff] }
 0x18d   :  { %v714_v22 = vadd.f32 1.0, %v2244_v32  ;;  %v2927_v32 = vld [vmem:[#allocation5 + $0x1a8] sm:$0xff] }
 0x18e   :  { %v2246_v50 = vpop.eup %2245  ;;  %1060 = vmatpush.msrb.mxu1 %v2927_v32 }
 0x18f   :  { %v2248_v52 = vpop.eup %2247  ;;  %v677_v53 = vmul.f32 %v2246_v50, %v675_v46  ;;  %2249 = vrcp.f32 %v714_v22  ;;  %vm682_vm13 = vweird.f32 %v2246_v50  ;;  %v726_v19 = vand.u32 2147483648, %v714_v22  ;;  %v2917_v46 = vld [vmem:[#allocation5 + $0x1d0] sm:$0xff] }
 0x190   :  { %v696_v56 = vmul.f32 %v2248_v52, %v694_v47  ;;  %2251 = vtanh.f32 %v670_v29  ;;  %vm701_vm14 = vweird.f32 %v2248_v52  ;;  %vm683_vm1 = vmor %vm681_vm15, %vm682_vm13  ;;  %vm720_vm6 = vweird.f32 %v714_v22  ;;  %3675 = vst [vmem:[#allocation25_spill] sm:$0xff] %v2917_v46  ;;  %v2921_v47 = vld [vmem:[#allocation5 + $0x1d8] sm:$0xff]  ;;  %1079 = vmatpush.msrb.mxu2 %v2917_v46  ;;  %v2937_v29 = vld [vmem:[#allocation5 + $0x180] sm:$0xff] }
 0x191   :  { %v678_v59 = vsub.f32 1.0, %v677_v53  ;;  %vm702_vm2 = vmor %vm700_vm0, %vm701_vm14  ;;  %v724_v20 = vand.u32 2147483647, %v714_v22  ;;  %v727_v27 = vor.u32 1.1754944e-38, %v726_v19  ;;  %3676 = vst [vmem:[#allocation26_spill] sm:$0xff] %v2921_v47  ;;  %1099 = vmatpush.msrb.mxu3 %v2921_v47  ;;  %v2941_v53 = vld [vmem:[#allocation5 + $0x190] sm:$0xff] }
 0x192   :  { %v697_v36 = vsub.f32 1.0, %v696_v56  ;;  %3678 = vst [vmem:[#allocation28_spill] sm:$0xff] %v2941_v53  ;;  %v2945_v56 = vld [vmem:[#allocation5 + $0x198] sm:$0xff] }
 0x193   :  { %v679_v30 = vmul.f32 %v2246_v50, %v678_v59  ;;  %vm725_vm8 = vcmp.eq.f32.partialorder %v724_v20, 8.507059e+37  ;;  %3679 = vst [vmem:[#allocation29_spill] sm:$0xff] %v2945_v56  ;;  %v2949_v59 = vld [vmem:[#allocation5 + $0x160] sm:$0xff]  ;;  %v3017_v20 = vld [vmem:[#allocation5 + $0xd8] sm:$0xff] }
 0x194   :  { %v698_v0 = vmul.f32 %v2248_v52, %v697_v36  ;;  %3680 = vst [vmem:[#allocation30_spill] sm:$0xff] %v2949_v59  ;;  %v2951_v36 = vld [vmem:[#allocation5 + $0x168] sm:$0xff] }
 0x195   :  { %v2250_v2 = vpop.eup %2249  ;;  %v680_v7 = vadd.f32 %v2246_v50, %v679_v30  ;;  %v2961_v30 = vld [vmem:[#allocation5 + $0x140] sm:$0xff] }
 0x196   :  { %v699_v8 = vadd.f32 %v2248_v52, %v698_v0  ;;  %v716_v10 = vmul.f32 %v2250_v2, %v714_v22  ;;  %v2252_v44 = vpop.eup %2251  ;;  %vm721_vm5 = vweird.f32 %v2250_v2  ;;  %v2929_v22 = vld [vmem:[#allocation5 + $0x1b0] sm:$0xff] }
 0x197   :  { %v684_v18 = vsel %vm683_vm1, %v2246_v50, %v680_v7  ;;  %vm722_vm7 = vmor %vm720_vm6, %vm721_vm5  ;;  %v2933_v50 = vld [vmem:[#allocation5 + $0x1b8] sm:$0xff]  ;;  %1080 = vmatpush.msrb.mxu2 %v2929_v22  ;;  %v2965_v0 = vld [vmem:[#allocation5 + $0x150] sm:$0xff] }
 0x198   :  { %v689_v58 = vsel %vm686_vm3, %v688_v35, %v684_v18  ;;  %v703_v4 = vsel %vm702_vm2, %v2248_v52, %v699_v8  ;;  %v717_v5 = vsub.f32 1.0, %v716_v10  ;;  %1100 = vmatpush.msrb.mxu3 %v2933_v50  ;;  %v2939_v52 = vld [vmem:[#allocation5 + $0x188] sm:$0xff]  ;;  %v2977_v35 = vld [vmem:[#allocation5 + $0x130] sm:$0xff]  ;;  %v2981_v8 = vld [vmem:[#allocation5 + $0x138] sm:$0xff] }
 0x199   :  { %v708_v31 = vsel %vm705_vm4, %v707_v12, %v703_v4  ;;  %v731_v9 = vmul.f32 %v2252_v44, %v689_v58  ;;  %3677 = vst [vmem:[#allocation27_spill] sm:$0xff] %v2939_v52  ;;  %1061 = vmatpush.msrb.mxu1 %v2939_v52  ;;  %1081 = vmatpush.msrb.mxu2 %v2941_v53  ;;  %v2975_v7 = vld [vmem:[#allocation5 + $0x128] sm:$0xff]  ;;  %v2985_v10 = vld [vmem:[#allocation5 + $0x100] sm:$0xff]  ;;  %v2989_v18 = vld [vmem:[#allocation5 + $0x110] sm:$0xff] }
 0x19a   :  { %v730_v13 = vmul.f32 %v708_v31, %v2890_v3  ;;  %v718_v14 = vmul.f32 %v2250_v2, %v717_v5  ;;  %v2901_v3 = vld [vmem:[#allocation5 + $0x1e0] sm:$0xff]  ;;  %1101 = vmatpush.msrb.mxu3 %v2945_v56  ;;  %3683 = vst [vmem:[#allocation33_spill] sm:$0xff] %v2981_v8  ;;  %v2987_v12 = vld [vmem:[#allocation5 + $0x108] sm:$0xff]  ;;  %v2993_v44 = vld [vmem:[#allocation5 + $0x118] sm:$0xff] }
 0x19b   :  { %1038 = vmatpush.msra.mxu0 %v2901_v3  ;;  %1062 = vmatpush.msrb.mxu1 %v2951_v36  ;;  %3684 = vst [vmem:[#allocation34_spill] sm:$0xff] %v2985_v10  ;;  %v2997_v58 = vld [vmem:[#allocation5 + $0xe0] sm:$0xff]  ;;  %v2999_v4 = vld [vmem:[#allocation5 + $0xe8] sm:$0xff]  ;;  %v3001_v5 = vld [vmem:[#allocation5 + $0xf0] sm:$0xff] }
 0x19c   :  { %v2898_v15 = vadd.f32 %v731_v9, %v730_v13  ;;  %v719_v17 = vadd.f32 %v2250_v2, %v718_v14  ;;  %1082 = vmatpush.msrb.mxu2 %v2953_v60  ;;  %1102 = vmatpush.msrb.mxu3 %v2957_v24  ;;  %3685 = vst [vmem:[#allocation35_spill] sm:$0xff] %v2987_v12  ;;  %v3005_v31 = vld [vmem:[#allocation5 + $0xf8] sm:$0xff]  ;;  %v3009_v9 = vld [vmem:[#allocation5 + $0xc0] sm:$0xff]  ;;  %v3011_v13 = vld [vmem:[#allocation5 + $0xc8] sm:$0xff] }
 0x19d   :  { %1039 = vmatpush.msra.mxu0 %v2913_v41  ;;  %1063 = vmatpush.msrb.mxu1 %v2963_v63  ;;  %v3013_v14 = vld [vmem:[#allocation5 + $0xd0] sm:$0xff] }
 0x19e   :  { %2253 = vtanh.f32 %v2898_v15  ;;  %v723_v26 = vsel %vm722_vm7, %v2250_v2, %v719_v17  ;;  %1083 = vmatpush.msrb.mxu2 %v2965_v0  ;;  %1103 = vmatpush.msrb.mxu3 %v2969_v1  ;;  %v2973_v2 = vld [vmem:[#allocation5 + $0x120] sm:$0xff] }
 0x19f   :  { %v728_v34 = vsel %vm725_vm8, %v727_v27, %v723_v26  ;;  %1040 = vmatpush.msra.mxu0 %v2925_v25  ;;  %3682 = vst [vmem:[#allocation32_spill] sm:$0xff] %v2973_v2  ;;  %1064 = vmatpush.msrb.mxu1 %v2975_v7 }
 0x1a0   :  { %1084 = vmatpush.msrb.mxu2 %v2977_v35  ;;  %1104 = vmatpush.msrb.mxu3 %v2981_v8 }
 0x1a1   :  { %1041 = vmatpush.msra.mxu0 %v2937_v29  ;;  %1065 = vmatpush.msrb.mxu1 %v2987_v12 }
 0x1a2   :  { %1085 = vmatpush.msrb.mxu2 %v2989_v18  ;;  %1105 = vmatpush.msrb.mxu3 %v2993_v44 }
 0x1a3   :  { %1042 = vmatpush.msra.mxu0 %v2949_v59  ;;  %1066 = vmatpush.msrb.mxu1 %v2999_v4 }
 0x1a4   :  { %v2254_v33 = vpop.eup %2253  ;;  %1086 = vmatpush.msrb.mxu2 %v3001_v5  ;;  %1106 = vmatpush.msrb.mxu3 %v3005_v31 }
 0x1a5   :  { %v734_v37 = vmul.f32 %v2254_v33, %v728_v34  ;;  %1043 = vmatpush.msra.mxu0 %v2961_v30  ;;  %1067 = vmatpush.msrb.mxu1 %v3011_v13  ;;  %v3023_v33 = vld [vmem:[#allocation5 + $0xa0] sm:$0xff]  ;;  %v3025_v34 = vld [vmem:[#allocation5 + $0xa8] sm:$0xff] }
 0x1a6   :  { %1087 = vmatpush.msrb.mxu2 %v3013_v14  ;;  %1107 = vmatpush.msrb.mxu3 %v3017_v20 }
 0x1a7   :  { %829 = vmatmul.f32.vlgmr.msrb.gmra.mxu0 %v734_v37  ;;  %849 = vmatmul.f32.vlgmr.msra.gmra.mxu1 %v734_v37 }
 0x1a8   :  { %869 = vmatmul.f32.vlgmr.msra.gmra.mxu2 %v734_v37  ;;  %889 = vmatmul.f32.vlgmr.msra.gmra.mxu3 %v734_v37  ;;  %v3027_v37 = vld [vmem:[#allocation5 + $0xb0] sm:$0xff] }
 0x1a9   :  { %1044 = vmatpush.msra.mxu0 %v2973_v2  ;;  %1068 = vmatpush.msrb.mxu1 %v3025_v34 }
 0x1aa   :  { %1088 = vmatpush.msrb.mxu2 %v3027_v37  ;;  %1108 = vmatpush.msrb.mxu3 %v3031_v6 }
 0x1ab   :  { %1045 = vmatpush.msra.mxu0 %v2985_v10 }
 0x1ac   :  { %1109 = vmatpush.msrb.mxu3 %v3043_v62 }
 0x1ad   :  { %1046 = vmatpush.msra.mxu0 %v2997_v58 }
 0x1ae   :  { %1110 = vmatpush.msrb.mxu3 %v3053_v57  ;;  %v3080_v57 = vld [vmem:[#allocation5] sm:$0xff] }
 0x1af   :  { %1047 = vmatpush.msra.mxu0 %v3009_v9 }
 0x1b0   :  { %1111 = vmatpush.msrb.mxu3 %v3065_v51 }
 0x1b1   :  { %1048 = vmatpush.msra.mxu0 %v3023_v33 }
 0x224   :  { %v830_v17 = vpop.f32.mrf.mxu0  ;;  %v850_v19 = vpop.f32.mrf.mxu1 }
 0x225   :  { %v893_v26 = vadd.f32 %v830_v17, %v2845_v28  ;;  %v894_v27 = vadd.f32 %v850_v19, %v2858_v40  ;;  %v3035_v40 = vld [vmem:[#allocation5 + $0x80] sm:$0xff]  ;;  %v3037_v17 = vld [vmem:[#allocation5 + $0x88] sm:$0xff]  ;;  %v3041_v19 = vld [vmem:[#allocation5 + $0x90] sm:$0xff] }
 0x226   :  { %1049 = vmatpush.msra.mxu0 %v3035_v40  ;;  %1069 = vmatpush.msrb.mxu1 %v3037_v17 }
 0x227   :  { %v2193_v11 = vmul.f32 -1.442695, %v893_v26  ;;  %v2194_v28 = vmul.f32 -1.442695, %v894_v27  ;;  %1089 = vmatpush.msrb.mxu2 %v3041_v19  ;;  %v3049_v26 = vld [vmem:[#allocation5 + $0x68] sm:$0xff]  ;;  %v3051_v27 = vld [vmem:[#allocation5 + $0x70] sm:$0xff] }
 0x228   :  { %3687 = vst [vmem:[#allocation37_spill] sm:$0xff] %v3049_v26  ;;  %1050 = vmatpush.msra.mxu0 %v3045_v16  ;;  %1070 = vmatpush.msrb.mxu1 %v3049_v26  ;;  %v3076_v26 = vld [vmem:[#allocation5 + $0x38] sm:$0xff] }
 0x229   :  { %2255 = vpow2.f32 %v2193_v11  ;;  %3688 = vst [vmem:[#allocation38_spill] sm:$0xff] %v3051_v27  ;;  %v3061_v11 = vld [vmem:[#allocation5 + $0x50] sm:$0xff]  ;;  %1090 = vmatpush.msrb.mxu2 %v3051_v27  ;;  %v3082_v27 = vld [vmem:[#allocation5 + $0x8] sm:$0xff]  ;;  %1112 = vmatpush.msrb.mxu3 %v3076_v26 }
 0x22a   :  { %2257 = vpow2.f32 %v2194_v28  ;;  %3691 = vst [vmem:[#allocation41_spill] sm:$0xff] %v3061_v11  ;;  %v3069_v28 = vld [vmem:[#allocation5 + $0x28] sm:$0xff]  ;;  %1051 = vmatpush.msra.mxu0 %v3057_v61  ;;  %1071 = vmatpush.msrb.mxu1 %v3059_v55 }
 0x22b   :  { %v890_v49 = vpop.f32.mrf.mxu3  ;;  %1091 = vmatpush.msrb.mxu2 %v3061_v11 }
 0x22c   :  { %v896_v48 = vadd.f32 %v890_v49, %v2863_v45  ;;  %1052 = vmatpush.msra.mxu0 %v3067_v54  ;;  %1072 = vmatpush.msrb.mxu1 %v3069_v28  ;;  %v3086_v45 = vld [vmem:[#allocation5 + $0x10] sm:$0xff]  ;;  %v3088_v49 = vld [vmem:[#allocation5 + $0x18] sm:$0xff] }
 0x22d   :  { %1092 = vmatpush.msrb.mxu2 %v3074_v39  ;;  %1113 = vmatpush.msrb.mxu3 %v3088_v49 }
 0x22e   :  { %v2195_v16 = vmul.f32 -1.442695, %v896_v48  ;;  %1053 = vmatpush.msra.mxu0 %v3080_v57  ;;  %1073 = vmatpush.msrb.mxu1 %v3082_v27 }
 0x22f   :  { %v2256_v55 = vpop.eup %2255  ;;  %1093 = vmatpush.msrb.mxu2 %v3086_v45  ;;  %1323 = vmatpush.msra.mxu3 %v2909_v38 }
 0x230   :  { %v2258_v11 = vpop.eup %2257  ;;  %v3092_v51 = vadd.f32 1.0, %v2256_v55  ;;  %2259 = vpow2.f32 %v2195_v16  ;;  %1263 = vmatpush.msrb.mxu0 %v2901_v3  ;;  %1283 = vmatpush.msra.mxu1 %v2903_v21  ;;  %v870_v16 = vpop.f32.mrf.mxu2 }
 0x231   :  { %v3096_v48 = vadd.f32 1.0, %v2258_v11  ;;  %1303 = vmatpush.msra.mxu2 %v2905_v23  ;;  %1324 = vmatpush.msra.mxu3 %v2921_v47 }
 0x232   :  { %2261 = vrcp.f32 %v3092_v51  ;;  %1264 = vmatpush.msrb.mxu0 %v2913_v41  ;;  %1284 = vmatpush.msra.mxu1 %v2915_v42  ;;  %v895_v41 = vadd.f32 %v870_v16, %v2861_v43  ;;  %vm906_vm11 = vweird.f32 %v3092_v51 }
 0x233   :  { %2263 = vrcp.f32 %v3096_v48  ;;  %1304 = vmatpush.msra.mxu2 %v2917_v46  ;;  %1325 = vmatpush.msra.mxu3 %v2933_v50  ;;  %vm925_vm12 = vweird.f32 %v3096_v48 }
 0x234   :  { %1265 = vmatpush.msrb.mxu0 %v2925_v25  ;;  %1285 = vmatpush.msra.mxu1 %v2927_v32 }
 0x235   :  { %1305 = vmatpush.msra.mxu2 %v2929_v22  ;;  %1326 = vmatpush.msra.mxu3 %v2945_v56  ;;  %v931_v56 = vand.u32 2147483648, %v3096_v48 }
 0x236   :  { %v2260_v55 = vpop.eup %2259  ;;  %1266 = vmatpush.msrb.mxu0 %v2937_v29  ;;  %1286 = vmatpush.msra.mxu1 %v2939_v52  ;;  %v912_v52 = vand.u32 2147483648, %v3092_v51 }
 0x237   :  { %v3112_v11 = vadd.f32 1.0, %v2260_v55  ;;  %1306 = vmatpush.msra.mxu2 %v2941_v53  ;;  %1327 = vmatpush.msra.mxu3 %v2957_v24 }
 0x238   :  { %v2262_v38 = vpop.eup %2261  ;;  %1267 = vmatpush.msrb.mxu0 %v2949_v59  ;;  %1287 = vmatpush.msra.mxu1 %v2951_v36  ;;  %v910_v59 = vand.u32 2147483647, %v3092_v51 }
 0x239   :  { %v2264_v46 = vpop.eup %2263  ;;  %v902_v47 = vmul.f32 %v2262_v38, %v3092_v51  ;;  %2265 = vrcp.f32 %v3112_v11  ;;  %1307 = vmatpush.msra.mxu2 %v2953_v60  ;;  %vm907_vm9 = vweird.f32 %v2262_v38  ;;  %1328 = vmatpush.msra.mxu3 %v2969_v1  ;;  %v932_v51 = vor.u32 1.1754944e-38, %v931_v56 }
 0x23a   :  { %v921_v55 = vmul.f32 %v2264_v46, %v3096_v48  ;;  %2267 = vtanh.f32 %v895_v41  ;;  %1268 = vmatpush.msrb.mxu0 %v2961_v30  ;;  %1288 = vmatpush.msra.mxu1 %v2963_v63  ;;  %vm926_vm10 = vweird.f32 %v2264_v46  ;;  %vm908_vm13 = vmor %vm906_vm11, %vm907_vm9  ;;  %vm911_vm15 = vcmp.eq.f32.partialorder %v910_v59, 8.507059e+37 }
 0x23b   :  { %v903_v43 = vsub.f32 1.0, %v902_v47  ;;  %1308 = vmatpush.msra.mxu2 %v2965_v0  ;;  %1329 = vmatpush.msra.mxu3 %v2981_v8  ;;  %vm927_vm14 = vmor %vm925_vm12, %vm926_vm10  ;;  %vm945_vm2 = vweird.f32 %v3112_v11 }
 0x23c   :  { %v922_v16 = vsub.f32 1.0, %v921_v55  ;;  %v929_v55 = vand.u32 2147483647, %v3096_v48  ;;  %1269 = vmatpush.msrb.mxu0 %v2973_v2  ;;  %1289 = vmatpush.msra.mxu1 %v2975_v7 }
 0x23d   :  { %v904_v53 = vmul.f32 %v2262_v38, %v903_v43  ;;  %1309 = vmatpush.msra.mxu2 %v2977_v35  ;;  %v913_v43 = vor.u32 1.1754944e-38, %v912_v52  ;;  %1330 = vmatpush.msra.mxu3 %v2993_v44 }
 0x23e   :  { %v923_v47 = vmul.f32 %v2264_v46, %v922_v16  ;;  %1270 = vmatpush.msrb.mxu0 %v2985_v10  ;;  %1290 = vmatpush.msra.mxu1 %v2987_v12  ;;  %vm930_vm0 = vcmp.eq.f32.partialorder %v929_v55, 8.507059e+37  ;;  %v3696_v55 = vld [vmem:[#allocation39_spill] sm:$0xff] }
 0x23f   :  { %v3138_v41 = vpop.eup %2265  ;;  %v905_v63 = vadd.f32 %v2262_v38, %v904_v53  ;;  %1310 = vmatpush.msra.mxu2 %v2989_v18  ;;  %1331 = vmatpush.msra.mxu3 %v3005_v31 }
 0x240   :  { %v924_v16 = vadd.f32 %v2264_v46, %v923_v47  ;;  %v941_v2 = vmul.f32 %v3138_v41, %v3112_v11  ;;  %v2268_v48 = vpop.eup %2267  ;;  %1271 = vmatpush.msrb.mxu0 %v2997_v58  ;;  %1291 = vmatpush.msra.mxu1 %v2999_v4  ;;  %vm946_vm1 = vweird.f32 %v3138_v41 }
 0x241   :  { %v909_v53 = vsel %vm908_vm13, %v2262_v38, %v905_v63  ;;  %1311 = vmatpush.msra.mxu2 %v3001_v5  ;;  %1332 = vmatpush.msra.mxu3 %v3017_v20  ;;  %v949_v63 = vand.u32 2147483647, %v3112_v11  ;;  %vm947_vm3 = vmor %vm945_vm2, %vm946_vm1 }
 0x242   :  { %v914_v8 = vsel %vm911_vm15, %v913_v43, %v909_v53  ;;  %v928_v52 = vsel %vm927_vm14, %v2264_v46, %v924_v16  ;;  %v942_v47 = vsub.f32 1.0, %v941_v2  ;;  %1272 = vmatpush.msrb.mxu0 %v3009_v9  ;;  %1292 = vmatpush.msra.mxu1 %v3011_v13  ;;  %v3693_v2 = vld [vmem:[#allocation36_spill] sm:$0xff] }
 0x243   :  { %v933_v10 = vsel %vm930_vm0, %v932_v51, %v928_v52  ;;  %v956_v12 = vmul.f32 %v2268_v48, %v914_v8  ;;  %1312 = vmatpush.msra.mxu2 %v3013_v14  ;;  %1333 = vmatpush.msra.mxu3 %v3031_v6  ;;  %v3694_v8 = vld [vmem:[#allocation37_spill] sm:$0xff]  ;;  %v3697_v16 = vld [vmem:[#allocation40_spill] sm:$0xff]  ;;  %vm950_vm4 = vcmp.eq.f32.partialorder %v949_v63, 8.507059e+37  ;;  %v3699_v51 = vld [vmem:[#allocation42_spill] sm:$0xff] }
 0x244   :  { %v955_v38 = vmul.f32 %v933_v10, %v2898_v15  ;;  %v943_v56 = vmul.f32 %v3138_v41, %v942_v47  ;;  %1273 = vmatpush.msrb.mxu0 %v3023_v33  ;;  %1293 = vmatpush.msra.mxu1 %v3025_v34  ;;  %v951_v15 = vand.u32 2147483648, %v3112_v11  ;;  %v3698_v11 = vld [vmem:[#allocation41_spill] sm:$0xff]  ;;  %v3700_v52 = vld [vmem:[#allocation23_spill] sm:$0xff]  ;;  %v3701_v47 = vld [vmem:[#allocation24_spill] sm:$0xff] }
 0x245   :  { %1313 = vmatpush.msra.mxu2 %v3027_v37  ;;  %1334 = vmatpush.msra.mxu3 %v3043_v62 }
 0x246   :  { %v3162_v46 = vadd.f32 %v956_v12, %v955_v38  ;;  %v944_v59 = vadd.f32 %v3138_v41, %v943_v56  ;;  %1274 = vmatpush.msrb.mxu0 %v3035_v40  ;;  %1294 = vmatpush.msra.mxu1 %v3037_v17  ;;  %v3695_v12 = vld [vmem:[#allocation38_spill] sm:$0xff]  ;;  %v952_v43 = vor.u32 1.1754944e-38, %v951_v15  ;;  %v3702_v38 = vld [vmem:[#allocation25_spill] sm:$0xff] }
 0x247   :  { %1314 = vmatpush.msra.mxu2 %v3041_v19  ;;  %1335 = vmatpush.msra.mxu3 %v3696_v55  ;;  %v3703_v56 = vld [vmem:[#allocation26_spill] sm:$0xff] }
 0x248   :  { %2269 = vtanh.f32 %v3162_v46  ;;  %1275 = vmatpush.msrb.mxu0 %v3693_v2  ;;  %1295 = vmatpush.msra.mxu1 %v3694_v8  ;;  %v948_v10 = vsel %vm947_vm3, %v3138_v41, %v944_v59 }
 0x249   :  { %1315 = vmatpush.msra.mxu2 %v3695_v12  ;;  %1336 = vmatpush.msra.mxu3 %v3699_v51  ;;  %v953_v48 = vsel %vm950_vm4, %v952_v43, %v948_v10 }
 0x24a   :  { %1276 = vmatpush.msrb.mxu0 %v3057_v61  ;;  %1296 = vmatpush.msra.mxu1 %v3697_v16 }
 0x24b   :  { %1316 = vmatpush.msra.mxu2 %v3698_v11  ;;  %1337 = vmatpush.msra.mxu3 %v3076_v26 }
 0x24c   :  { %1277 = vmatpush.msrb.mxu0 %v3067_v54  ;;  %1297 = vmatpush.msra.mxu1 %v3069_v28 }
 0x24d   :  { %1317 = vmatpush.msra.mxu2 %v3074_v39  ;;  %1338 = vmatpush.msra.mxu3 %v3088_v49 }
 0x24e   :  { %v2270_v53 = vpop.eup %2269  ;;  %1278 = vmatpush.msrb.mxu0 %v3080_v57  ;;  %1298 = vmatpush.msra.mxu1 %v3082_v27 }
 0x24f   :  { %v959_v41 = vmul.f32 %v2270_v53, %v953_v48  ;;  %1318 = vmatpush.msra.mxu2 %v3086_v45 }
 0x251   :  { %1054 = vmatmul.f32.vlgmr.msra.gmra.mxu0 %v959_v41  ;;  %1074 = vmatmul.f32.vlgmr.msrb.gmra.mxu1 %v959_v41 }
 0x252   :  { %1094 = vmatmul.f32.vlgmr.msrb.gmra.mxu2 %v959_v41  ;;  %1114 = vmatmul.f32.vlgmr.msrb.gmra.mxu3 %v959_v41 }
 0x253   :  { %1488 = vmatpush.msra.mxu0 %v2901_v3  ;;  %1508 = vmatpush.msrb.mxu1 %v2903_v21  ;;  %v3704_v3 = vld [vmem:[#allocation27_spill] sm:$0xff]  ;;  %v3705_v21 = vld [vmem:[#allocation28_spill] sm:$0xff] }
 0x254   :  { %1528 = vmatpush.msrb.mxu2 %v2905_v23  ;;  %1548 = vmatpush.msrb.mxu3 %v3700_v52  ;;  %v3706_v23 = vld [vmem:[#allocation29_spill] sm:$0xff] }
 0x255   :  { %1489 = vmatpush.msra.mxu0 %v3701_v47  ;;  %1509 = vmatpush.msrb.mxu1 %v2915_v42  ;;  %v3707_v42 = vld [vmem:[#allocation30_spill] sm:$0xff] }
 0x256   :  { %1529 = vmatpush.msrb.mxu2 %v3702_v38  ;;  %1549 = vmatpush.msrb.mxu3 %v3703_v56 }
 0x257   :  { %1490 = vmatpush.msra.mxu0 %v2925_v25  ;;  %1510 = vmatpush.msrb.mxu1 %v2927_v32  ;;  %v3708_v25 = vld [vmem:[#allocation31_spill] sm:$0xff]  ;;  %v3709_v32 = vld [vmem:[#allocation32_spill] sm:$0xff] }
 0x258   :  { %1530 = vmatpush.msrb.mxu2 %v2929_v22  ;;  %1550 = vmatpush.msrb.mxu3 %v2933_v50  ;;  %v3710_v22 = vld [vmem:[#allocation33_spill] sm:$0xff]  ;;  %v3711_v50 = vld [vmem:[#allocation34_spill] sm:$0xff] }
 0x259   :  { %1491 = vmatpush.msra.mxu0 %v2937_v29  ;;  %1511 = vmatpush.msrb.mxu1 %v3704_v3  ;;  %v3712_v29 = vld [vmem:[#allocation35_spill] sm:$0xff] }
 0x25a   :  { %1531 = vmatpush.msrb.mxu2 %v3705_v21  ;;  %1551 = vmatpush.msrb.mxu3 %v3706_v23 }
 0x25b   :  { %1492 = vmatpush.msra.mxu0 %v3707_v42  ;;  %1512 = vmatpush.msrb.mxu1 %v2951_v36 }
 0x25c   :  { %1532 = vmatpush.msrb.mxu2 %v2953_v60  ;;  %1552 = vmatpush.msrb.mxu3 %v2957_v24  ;;  %v3714_v60 = vld [vmem:[#allocation11_spill] sm:$0xff] }
 0x25d   :  { %1493 = vmatpush.msra.mxu0 %v2961_v30  ;;  %1513 = vmatpush.msrb.mxu1 %v3708_v25  ;;  %v3717_v25 = vld [vmem:[#allocation14_spill] sm:$0xff] }
 0x25e   :  { %1533 = vmatpush.msrb.mxu2 %v2965_v0  ;;  %1553 = vmatpush.msrb.mxu3 %v2969_v1  ;;  %v3715_v0 = vld [vmem:[#allocation16_spill] sm:$0xff] }
 0x25f   :  { %1494 = vmatpush.msra.mxu0 %v3709_v32  ;;  %1514 = vmatpush.msrb.mxu1 %v2975_v7 }
 0x260   :  { %1534 = vmatpush.msrb.mxu2 %v2977_v35  ;;  %1554 = vmatpush.msrb.mxu3 %v3710_v22  ;;  %v3718_v22 = vld [vmem:[#allocation17_spill] sm:$0xff] }
 0x261   :  { %1495 = vmatpush.msra.mxu0 %v3711_v50  ;;  %1515 = vmatpush.msrb.mxu1 %v3712_v29 }
 0x262   :  { %1535 = vmatpush.msrb.mxu2 %v2989_v18  ;;  %1555 = vmatpush.msrb.mxu3 %v2993_v44 }
 0x263   :  { %1496 = vmatpush.msra.mxu0 %v2997_v58  ;;  %1516 = vmatpush.msrb.mxu1 %v2999_v4 }
 0x264   :  { %1536 = vmatpush.msrb.mxu2 %v3001_v5  ;;  %1556 = vmatpush.msrb.mxu3 %v3005_v31 }
 0x265   :  { %1497 = vmatpush.msra.mxu0 %v3009_v9  ;;  %1517 = vmatpush.msrb.mxu1 %v3011_v13  ;;  %v3716_v9 = vld [vmem:[#allocation15_spill] sm:$0xff] }
 0x266   :  { %1537 = vmatpush.msrb.mxu2 %v3013_v14  ;;  %1557 = vmatpush.msrb.mxu3 %v3017_v20 }
 0x267   :  { %1498 = vmatpush.msra.mxu0 %v3023_v33  ;;  %1518 = vmatpush.msrb.mxu1 %v3025_v34 }
 0x268   :  { %1538 = vmatpush.msrb.mxu2 %v3027_v37  ;;  %1558 = vmatpush.msrb.mxu3 %v3031_v6  ;;  %v3713_v6 = vld [vmem:[#allocation12_spill] sm:$0xff] }
 0x269   :  { %1499 = vmatpush.msra.mxu0 %v3035_v40  ;;  %1519 = vmatpush.msrb.mxu1 %v3037_v17 }
 0x26a   :  { %1539 = vmatpush.msrb.mxu2 %v3041_v19  ;;  %1559 = vmatpush.msrb.mxu3 %v3043_v62 }
 0x26b   :  { %1500 = vmatpush.msra.mxu0 %v3693_v2  ;;  %1520 = vmatpush.msrb.mxu1 %v3694_v8 }
 0x26c   :  { %1540 = vmatpush.msrb.mxu2 %v3695_v12  ;;  %1560 = vmatpush.msrb.mxu3 %v3696_v55 }
 0x26d   :  { %1501 = vmatpush.msra.mxu0 %v3057_v61  ;;  %1521 = vmatpush.msrb.mxu1 %v3697_v16 }
 0x26e   :  { %1541 = vmatpush.msrb.mxu2 %v3698_v11  ;;  %1561 = vmatpush.msrb.mxu3 %v3699_v51 }
 0x26f   :  { %1502 = vmatpush.msra.mxu0 %v3067_v54  ;;  %1522 = vmatpush.msrb.mxu1 %v3069_v28 }
 0x270   :  { %1542 = vmatpush.msrb.mxu2 %v3074_v39  ;;  %1562 = vmatpush.msrb.mxu3 %v3076_v26 }
 0x271   :  { %1503 = vmatpush.msra.mxu0 %v3080_v57  ;;  %1523 = vmatpush.msrb.mxu1 %v3082_v27 }
 0x272   :  { %1543 = vmatpush.msrb.mxu2 %v3086_v45  ;;  %1563 = vmatpush.msrb.mxu3 %v3088_v49 }
 0x2ce   :  { %v1055_v61 = vpop.f32.mrf.mxu0  ;;  %v1075_v62 = vpop.f32.mrf.mxu1 }
 0x2cf   :  { %v1118_v36 = vadd.f32 %v1055_v61, %v3713_v6  ;;  %v1119_v54 = vadd.f32 %v1075_v62, %v3714_v60  ;;  %v3719_v6 = vld [vmem:[#allocation19_spill] sm:$0xff] }
 0x2d1   :  { %v2196_v24 = vmul.f32 -1.442695, %v1118_v36  ;;  %v2197_v30 = vmul.f32 -1.442695, %v1119_v54 }
 0x2d3   :  { %2271 = vpow2.f32 %v2196_v24 }
 0x2d4   :  { %2273 = vpow2.f32 %v2197_v30 }
 0x2d5   :  { %v1115_v39 = vpop.f32.mrf.mxu3  ;;  %v1095_v58 = vpop.f32.mrf.mxu2 }
 0x2d6   :  { %v1121_v1 = vadd.f32 %v1115_v39, %v3715_v0  ;;  %v1120_v13 = vadd.f32 %v1095_v58, %v3716_v9  ;;  %v3275_v0 = vld [vmem:[#allocation5 + $0x1e0] sm:$0xff]  ;;  %v3292_v58 = vld [vmem:[#allocation5 + $0x1c8] sm:$0xff] }
 0x2d7   :  { %v3298_v9 = vld [vmem:[#allocation5 + $0x180] sm:$0xff] }
 0x2d8   :  { %v2198_v57 = vmul.f32 -1.442695, %v1121_v1  ;;  %v3277_v1 = vld [vmem:[#allocation5 + $0x1c0] sm:$0xff] }
 0x2d9   :  { %v2272_v7 = vpop.eup %2271 }
 0x2da   :  { %v2274_v35 = vpop.eup %2273  ;;  %v1125_v18 = vadd.f32 1.0, %v2272_v7  ;;  %2275 = vpow2.f32 %v2198_v57  ;;  %v3281_v57 = vld [vmem:[#allocation5 + $0x1e8] sm:$0xff]  ;;  %v3283_v7 = vld [vmem:[#allocation5 + $0x1a0] sm:$0xff] }
 0x2db   :  { %v1144_v44 = vadd.f32 1.0, %v2274_v35  ;;  %v3286_v35 = vld [vmem:[#allocation5 + $0x1f0] sm:$0xff] }
 0x2dc   :  { %2277 = vrcp.f32 %v1125_v18  ;;  %v1137_v40 = vand.u32 2147483648, %v1125_v18  ;;  %v1135_v26 = vand.u32 2147483647, %v1125_v18  ;;  %vm1131_vm7 = vweird.f32 %v1125_v18 }
 0x2dd   :  { %2279 = vrcp.f32 %v1144_v44  ;;  %v1156_v17 = vand.u32 2147483648, %v1144_v44  ;;  %v1154_v28 = vand.u32 2147483647, %v1144_v44  ;;  %vm1150_vm8 = vweird.f32 %v1144_v44 }
 0x2de   :  { %v1138_v59 = vor.u32 1.1754944e-38, %v1137_v40  ;;  %vm1136_vm11 = vcmp.eq.f32.partialorder %v1135_v26, 8.507059e+37  ;;  %v3720_v40 = vld [vmem:[#allocation18_spill] sm:$0xff]  ;;  %v3319_v26 = vld [vmem:[#allocation5 + $0x190] sm:$0xff] }
 0x2df   :  { %v1157_v2 = vor.u32 1.1754944e-38, %v1156_v17  ;;  %vm1155_vm12 = vcmp.eq.f32.partialorder %v1154_v28, 8.507059e+37 }
 0x2e0   :  { %v2276_v4 = vpop.eup %2275 }
 0x2e1   :  { %v1164_v5 = vadd.f32 1.0, %v2276_v4  ;;  %v3294_v4 = vld [vmem:[#allocation5 + $0x1d0] sm:$0xff] }
 0x2e2   :  { %v2278_v31 = vpop.eup %2277 }
 0x2e3   :  { %v2280_v14 = vpop.eup %2279  ;;  %v1127_v20 = vmul.f32 %v2278_v31, %v1125_v18  ;;  %2281 = vrcp.f32 %v1164_v5  ;;  %vm1132_vm5 = vweird.f32 %v2278_v31  ;;  %v1176_v52 = vand.u32 2147483648, %v1164_v5  ;;  %v3288_v18 = vld [vmem:[#allocation5 + $0x1f8] sm:$0xff] }
 0x2e4   :  { %v1146_v33 = vmul.f32 %v2280_v14, %v1144_v44  ;;  %2283 = vtanh.f32 %v1120_v13  ;;  %vm1151_vm6 = vweird.f32 %v2280_v14  ;;  %vm1133_vm9 = vmor %vm1131_vm7, %vm1132_vm5  ;;  %vm1170_vm14 = vweird.f32 %v1164_v5  ;;  %v3302_v13 = vld [vmem:[#allocation5 + $0x1a8] sm:$0xff] }
 0x2e5   :  { %v1128_v34 = vsub.f32 1.0, %v1127_v20  ;;  %vm1152_vm10 = vmor %vm1150_vm8, %vm1151_vm6  ;;  %v1174_v47 = vand.u32 2147483647, %v1164_v5  ;;  %v1177_v56 = vor.u32 1.1754944e-38, %v1176_v52 }
 0x2e6   :  { %v1147_v37 = vsub.f32 1.0, %v1146_v33  ;;  %v3310_v33 = vld [vmem:[#allocation5 + $0x1b8] sm:$0xff] }
 0x2e7   :  { %v1129_v19 = vmul.f32 %v2278_v31, %v1128_v34  ;;  %vm1175_vm0 = vcmp.eq.f32.partialorder %v1174_v47, 8.507059e+37  ;;  %v3312_v34 = vld [vmem:[#allocation5 + $0x188] sm:$0xff] }
 0x2e8   :  { %v1148_v27 = vmul.f32 %v2280_v14, %v1147_v37 }
 0x2e9   :  { %v2282_v45 = vpop.eup %2281  ;;  %v1130_v49 = vadd.f32 %v2278_v31, %v1129_v19  ;;  %v3315_v19 = vld [vmem:[#allocation5 + $0x160] sm:$0xff] }
 0x2ea   :  { %v1149_v15 = vadd.f32 %v2280_v14, %v1148_v27  ;;  %v1166_v63 = vmul.f32 %v2282_v45, %v1164_v5  ;;  %v2284_v10 = vpop.eup %2283  ;;  %vm1171_vm13 = vweird.f32 %v2282_v45  ;;  %v3296_v5 = vld [vmem:[#allocation5 + $0x1d8] sm:$0xff] }
 0x2eb   :  { %v1134_v8 = vsel %vm1133_vm9, %v2278_v31, %v1130_v49  ;;  %vm1172_vm15 = vmor %vm1170_vm14, %vm1171_vm13  ;;  %v3327_v49 = vld [vmem:[#allocation5 + $0x168] sm:$0xff] }
 0x2ec   :  { %v1139_v12 = vsel %vm1136_vm11, %v1138_v59, %v1134_v8  ;;  %v1153_v55 = vsel %vm1152_vm10, %v2280_v14, %v1149_v15  ;;  %v1167_v43 = vsub.f32 1.0, %v1166_v63  ;;  %v3304_v14 = vld [vmem:[#allocation5 + $0x1b0] sm:$0xff]  ;;  %v3330_v15 = vld [vmem:[#allocation5 + $0x140] sm:$0xff]  ;;  %v3338_v8 = vld [vmem:[#allocation5 + $0x178] sm:$0xff] }
 0x2ed   :  { %v1158_v16 = vsel %vm1155_vm12, %v1157_v2, %v1153_v55  ;;  %v1181_v11 = vmul.f32 %v2284_v10, %v1139_v12  ;;  %v3334_v63 = vld [vmem:[#allocation5 + $0x170] sm:$0xff]  ;;  %v3341_v55 = vld [vmem:[#allocation5 + $0x120] sm:$0xff] }
 0x2ee   :  { %v1180_v51 = vmul.f32 %v1158_v16, %v3162_v46  ;;  %v1168_v53 = vmul.f32 %v2282_v45, %v1167_v43 }
 0x2f0   :  { %v3264_v48 = vadd.f32 %v1181_v11, %v1180_v51  ;;  %v1169_v41 = vadd.f32 %v2282_v45, %v1168_v53 }
 0x2f2   :  { %2285 = vtanh.f32 %v3264_v48  ;;  %v1173_v38 = vsel %vm1172_vm15, %v2282_v45, %v1169_v41  ;;  %v3325_v45 = vld [vmem:[#allocation5 + $0x198] sm:$0xff]  ;;  %v3350_v41 = vld [vmem:[#allocation5 + $0x100] sm:$0xff] }
 0x2f3   :  { %v1178_v21 = vsel %vm1175_vm0, %v1177_v56, %v1173_v38 }
 0x2f8   :  { %v2286_v3 = vpop.eup %2285 }
 0x2f9   :  { %v1184_v23 = vmul.f32 %v2286_v3, %v1178_v21  ;;  %v3357_v21 = vld [vmem:[#allocation5 + $0xe0] sm:$0xff] }
 0x2fb   :  { %1279 = vmatmul.f32.vlgmr.msrb.gmra.mxu0 %v1184_v23  ;;  %1299 = vmatmul.f32.vlgmr.msra.gmra.mxu1 %v1184_v23 }
 0x2fc   :  { %1319 = vmatmul.f32.vlgmr.msra.gmra.mxu2 %v1184_v23  ;;  %1339 = vmatmul.f32.vlgmr.msra.gmra.mxu3 %v1184_v23 }
 0x2fd   :  { %1713 = vmatpush.msrb.mxu0 %v3275_v0  ;;  %1733 = vmatpush.msra.mxu1 %v3281_v57 }
 0x2fe   :  { %1753 = vmatpush.msra.mxu2 %v3286_v35  ;;  %1773 = vmatpush.msra.mxu3 %v3288_v18 }
 0x2ff   :  { %1714 = vmatpush.msrb.mxu0 %v3277_v1  ;;  %1734 = vmatpush.msra.mxu1 %v3292_v58 }
 0x300   :  { %1754 = vmatpush.msra.mxu2 %v3294_v4  ;;  %1774 = vmatpush.msra.mxu3 %v3296_v5 }
 0x301   :  { %1715 = vmatpush.msrb.mxu0 %v3283_v7  ;;  %1735 = vmatpush.msra.mxu1 %v3302_v13 }
 0x302   :  { %1755 = vmatpush.msra.mxu2 %v3304_v14  ;;  %1775 = vmatpush.msra.mxu3 %v3310_v33 }
 0x303   :  { %1716 = vmatpush.msrb.mxu0 %v3298_v9  ;;  %1736 = vmatpush.msra.mxu1 %v3312_v34 }
 0x304   :  { %1756 = vmatpush.msra.mxu2 %v3319_v26  ;;  %1776 = vmatpush.msra.mxu3 %v3325_v45 }
 0x305   :  { %1717 = vmatpush.msrb.mxu0 %v3315_v19  ;;  %1737 = vmatpush.msra.mxu1 %v3327_v49 }
 0x306   :  { %1757 = vmatpush.msra.mxu2 %v3334_v63  ;;  %1777 = vmatpush.msra.mxu3 %v3338_v8 }
 0x307   :  { %1718 = vmatpush.msrb.mxu0 %v3330_v15 }
 0x309   :  { %1719 = vmatpush.msrb.mxu0 %v3341_v55 }
 0x30b   :  { %1720 = vmatpush.msrb.mxu0 %v3350_v41 }
 0x30d   :  { %1721 = vmatpush.msrb.mxu0 %v3357_v21 }
 0x378   :  { %v1280_v46 = vpop.f32.mrf.mxu0  ;;  %v1300_v42 = vpop.f32.mrf.mxu1 }
 0x379   :  { %v1343_v32 = vadd.f32 %v1280_v46, %v3717_v25  ;;  %v1344_v50 = vadd.f32 %v1300_v42, %v3718_v22 }
 0x37b   :  { %v2199_v29 = vmul.f32 -1.442695, %v1343_v32  ;;  %v2200_v61 = vmul.f32 -1.442695, %v1344_v50 }
 0x37d   :  { %2287 = vpow2.f32 %v2199_v29 }
 0x37e   :  { %2289 = vpow2.f32 %v2200_v61 }
 0x37f   :  { %v1340_v62 = vpop.f32.mrf.mxu3  ;;  %v1320_v44 = vpop.f32.mrf.mxu2 }
 0x380   :  { %v1346_v36 = vadd.f32 %v1340_v62, %v3719_v6  ;;  %v1345_v17 = vadd.f32 %v1320_v44, %v3720_v40  ;;  %v3372_v40 = vld [vmem:[#allocation5 + $0x150] sm:$0xff] }
 0x381   :  { %1758 = vmatpush.msra.mxu2 %v3372_v40 }
 0x382   :  { %v2201_v60 = vmul.f32 -1.442695, %v1346_v36 }
 0x383   :  { %v2288_v54 = vpop.eup %2287 }
 0x384   :  { %v2290_v24 = vpop.eup %2289  ;;  %v3270_v30 = vadd.f32 1.0, %v2288_v54  ;;  %2291 = vpow2.f32 %v2201_v60 }
 0x385   :  { %v3272_v39 = vadd.f32 1.0, %v2290_v24 }
 0x386   :  { %2293 = vrcp.f32 %v3270_v30  ;;  %v1362_v12 = vand.u32 2147483648, %v3270_v30  ;;  %v1360_v11 = vand.u32 2147483647, %v3270_v30  ;;  %vm1356_vm3 = vweird.f32 %v3270_v30 }
 0x387   :  { %2295 = vrcp.f32 %v3272_v39  ;;  %v1381_v43 = vand.u32 2147483648, %v3272_v39  ;;  %v1379_v53 = vand.u32 2147483647, %v3272_v39  ;;  %vm1375_vm4 = vweird.f32 %v3272_v39 }
 0x388   :  { %v1363_v38 = vor.u32 1.1754944e-38, %v1362_v12  ;;  %vm1361_vm7 = vcmp.eq.f32.partialorder %v1360_v11, 8.507059e+37  ;;  %v3396_v12 = vld [vmem:[#allocation5 + $0x110] sm:$0xff]  ;;  %v3406_v11 = vld [vmem:[#allocation5 + $0xe8] sm:$0xff] }
 0x389   :  { %v1382_v23 = vor.u32 1.1754944e-38, %v1381_v43  ;;  %vm1380_vm8 = vcmp.eq.f32.partialorder %v1379_v53, 8.507059e+37  ;;  %v3400_v43 = vld [vmem:[#allocation5 + $0x118] sm:$0xff] }
 0x38a   :  { %v2292_v31 = vpop.eup %2291  ;;  %v3412_v53 = vld [vmem:[#allocation5 + $0xf8] sm:$0xff] }
 0x38b   :  { %v3306_v20 = vadd.f32 1.0, %v2292_v31  ;;  %v3368_v31 = vld [vmem:[#allocation5 + $0xc0] sm:$0xff] }
 0x38c   :  { %v2294_v37 = vpop.eup %2293  ;;  %1722 = vmatpush.msrb.mxu0 %v3368_v31 }
 0x38d   :  { %v2296_v27 = vpop.eup %2295  ;;  %v1352_v28 = vmul.f32 %v2294_v37, %v3270_v30  ;;  %2297 = vrcp.f32 %v3306_v20  ;;  %vm1357_vm1 = vweird.f32 %v2294_v37  ;;  %v1401_v60 = vand.u32 2147483648, %v3306_v20 }
 0x38e   :  { %v1371_v59 = vmul.f32 %v2296_v27, %v3272_v39  ;;  %2299 = vtanh.f32 %v1345_v17  ;;  %vm1376_vm2 = vweird.f32 %v2296_v27  ;;  %vm1358_vm5 = vmor %vm1356_vm3, %vm1357_vm1  ;;  %vm1395_vm10 = vweird.f32 %v3306_v20  ;;  %v3380_v17 = vld [vmem:[#allocation5 + $0xa0] sm:$0xff] }
 0x38f   :  { %v1353_v2 = vsub.f32 1.0, %v1352_v28  ;;  %vm1377_vm6 = vmor %vm1375_vm4, %vm1376_vm2  ;;  %v1399_v54 = vand.u32 2147483647, %v3306_v20  ;;  %v1402_v30 = vor.u32 1.1754944e-38, %v1401_v60  ;;  %v3384_v28 = vld [vmem:[#allocation5 + $0x130] sm:$0xff]  ;;  %1723 = vmatpush.msrb.mxu0 %v3380_v17 }
 0x390   :  { %v1372_v10 = vsub.f32 1.0, %v1371_v59  ;;  %v3388_v59 = vld [vmem:[#allocation5 + $0x138] sm:$0xff]  ;;  %1759 = vmatpush.msra.mxu2 %v3384_v28  ;;  %v3464_v60 = vld [vmem:[#allocation5 + $0x50] sm:$0xff] }
 0x391   :  { %v1354_v16 = vmul.f32 %v2294_v37, %v1353_v2  ;;  %vm1400_vm12 = vcmp.eq.f32.partialorder %v1399_v54, 8.507059e+37  ;;  %v3392_v2 = vld [vmem:[#allocation5 + $0x80] sm:$0xff]  ;;  %v3466_v54 = vld [vmem:[#allocation5 + $0x58] sm:$0xff] }
 0x392   :  { %v1373_v51 = vmul.f32 %v2296_v27, %v1372_v10  ;;  %v3394_v10 = vld [vmem:[#allocation5 + $0x108] sm:$0xff]  ;;  %1724 = vmatpush.msrb.mxu0 %v3392_v2  ;;  %1760 = vmatpush.msra.mxu2 %v3396_v12 }
 0x393   :  { %v2298_v52 = vpop.eup %2297  ;;  %v1355_v47 = vadd.f32 %v2294_v37, %v1354_v16  ;;  %v3404_v16 = vld [vmem:[#allocation5 + $0x60] sm:$0xff] }
 0x394   :  { %v1374_v56 = vadd.f32 %v2296_v27, %v1373_v51  ;;  %v1391_v3 = vmul.f32 %v2298_v52, %v3306_v20  ;;  %v2300_v42 = vpop.eup %2299  ;;  %vm1396_vm9 = vweird.f32 %v2298_v52  ;;  %v3376_v20 = vld [vmem:[#allocation5 + $0x158] sm:$0xff]  ;;  %v3408_v51 = vld [vmem:[#allocation5 + $0xf0] sm:$0xff]  ;;  %1725 = vmatpush.msrb.mxu0 %v3404_v16 }
 0x395   :  { %v1359_v46 = vsel %vm1358_vm5, %v2294_v37, %v1355_v47  ;;  %vm1397_vm11 = vmor %vm1395_vm10, %vm1396_vm9  ;;  %v3370_v37 = vld [vmem:[#allocation5 + $0x148] sm:$0xff]  ;;  %1778 = vmatpush.msra.mxu3 %v3376_v20  ;;  %1761 = vmatpush.msra.mxu2 %v3408_v51  ;;  %vm2136_vm9 = vcmask 64512  }
 0x396   :  { %v1364_v25 = vsel %vm1361_vm7, %v1363_v38, %v1359_v46  ;;  %v1378_v32 = vsel %vm1377_vm6, %v2296_v27, %v1374_v56  ;;  %v1392_v22 = vsub.f32 1.0, %v1391_v3  ;;  %1738 = vmatpush.msra.mxu1 %v3370_v37  ;;  %v3382_v27 = vld [vmem:[#allocation5 + $0x128] sm:$0xff]  ;;  %v3420_v38 = vld [vmem:[#allocation5 + $0xd0] sm:$0xff]  ;;  %v3424_v56 = vld [vmem:[#allocation5 + $0xd8] sm:$0xff] }
 0x397   :  { %v1383_v50 = vsel %vm1380_vm8, %v1382_v23, %v1378_v32  ;;  %v1406_v29 = vmul.f32 %v2300_v42, %v1364_v25  ;;  %1779 = vmatpush.msra.mxu3 %v3388_v59  ;;  %v3418_v47 = vld [vmem:[#allocation5 + $0xc8] sm:$0xff]  ;;  %1762 = vmatpush.msra.mxu2 %v3420_v38  ;;  %v3428_v3 = vld [vmem:[#allocation5 + $0x20] sm:$0xff]  ;;  %v3432_v46 = vld [vmem:[#allocation5 + $0xb0] sm:$0xff] }
 0x398   :  { %v1405_v61 = vmul.f32 %v1383_v50, %v3264_v48  ;;  %v1393_v62 = vmul.f32 %v2298_v52, %v1392_v22  ;;  %1739 = vmatpush.msra.mxu1 %v3382_v27  ;;  %v3430_v23 = vld [vmem:[#allocation5 + $0xa8] sm:$0xff]  ;;  %v3436_v42 = vld [vmem:[#allocation5 + $0xb8] sm:$0xff]  ;;  %v3440_v25 = vld [vmem:[#allocation5] sm:$0xff] }
 0x399   :  { %1780 = vmatpush.msra.mxu3 %v3400_v43  ;;  %1763 = vmatpush.msra.mxu2 %v3432_v46  ;;  %v3442_v32 = vld [vmem:[#allocation5 + $0x88] sm:$0xff]  ;;  %v3444_v22 = vld [vmem:[#allocation5 + $0x90] sm:$0xff]  ;;  %v3448_v50 = vld [vmem:[#allocation5 + $0x98] sm:$0xff] }
 0x39a   :  { %v3362_v6 = vadd.f32 %v1406_v29, %v1405_v61  ;;  %v1394_v36 = vadd.f32 %v2298_v52, %v1393_v62  ;;  %1740 = vmatpush.msra.mxu1 %v3394_v10  ;;  %v3452_v29 = vld [vmem:[#allocation5 + $0x68] sm:$0xff]  ;;  %v3454_v61 = vld [vmem:[#allocation5 + $0x70] sm:$0xff]  ;;  %v3456_v62 = vld [vmem:[#allocation5 + $0x78] sm:$0xff] }
 0x39b   :  { %1781 = vmatpush.msra.mxu3 %v3412_v53  ;;  %1764 = vmatpush.msra.mxu2 %v3444_v22 }
 0x39c   :  { %2301 = vtanh.f32 %v3362_v6  ;;  %v1398_v24 = vsel %vm1397_vm11, %v2298_v52, %v1394_v36  ;;  %1741 = vmatpush.msra.mxu1 %v3406_v11  ;;  %v3416_v52 = vld [vmem:[#allocation5 + $0x40] sm:$0xff]  ;;  %v3462_v36 = vld [vmem:[#allocation5 + $0x48] sm:$0xff] }
 0x39d   :  { %v1403_v44 = vsel %vm1400_vm12, %v1402_v30, %v1398_v24  ;;  %1726 = vmatpush.msrb.mxu0 %v3416_v52  ;;  %1782 = vmatpush.msra.mxu3 %v3424_v56  ;;  %v3474_v24 = vld [vmem:[#allocation5 + $0x30] sm:$0xff]  ;;  %v3476_v30 = vld [vmem:[#allocation5 + $0x38] sm:$0xff] }
 0x39e   :  { %1742 = vmatpush.msra.mxu1 %v3418_v47  ;;  %1765 = vmatpush.msra.mxu2 %v3454_v61 }
 0x39f   :  { %1727 = vmatpush.msrb.mxu0 %v3428_v3  ;;  %1783 = vmatpush.msra.mxu3 %v3436_v42 }
 0x3a0   :  { %1743 = vmatpush.msra.mxu1 %v3430_v23  ;;  %1766 = vmatpush.msra.mxu2 %v3464_v60 }
 0x3a1   :  { %1728 = vmatpush.msrb.mxu0 %v3440_v25  ;;  %1784 = vmatpush.msra.mxu3 %v3448_v50 }
 0x3a2   :  { %v2302_v39 = vpop.eup %2301  ;;  %1744 = vmatpush.msra.mxu1 %v3442_v32  ;;  %1767 = vmatpush.msra.mxu2 %v3474_v24 }
 0x3a3   :  { %v1409_v48 = vmul.f32 %v2302_v39, %v1403_v44  ;;  %1785 = vmatpush.msra.mxu3 %v3456_v62  ;;  %v3484_v39 = vld [vmem:[#allocation5 + $0x10] sm:$0xff]  ;;  %v3486_v44 = vld [vmem:[#allocation5 + $0x18] sm:$0xff] }
 0x3a4   :  { %1745 = vmatpush.msra.mxu1 %v3452_v29  ;;  %1768 = vmatpush.msra.mxu2 %v3484_v39 }
 0x3a5   :  { %1504 = vmatmul.f32.vlgmr.msra.gmra.mxu0 %v1409_v48  ;;  %1524 = vmatmul.f32.vlgmr.msrb.gmra.mxu1 %v1409_v48 }
 0x3a6   :  { %1544 = vmatmul.f32.vlgmr.msrb.gmra.mxu2 %v1409_v48  ;;  %1564 = vmatmul.f32.vlgmr.msrb.gmra.mxu3 %v1409_v48 }
 0x3a7   :  { %1938 = vmatpush.msra.mxu0 %v3275_v0  ;;  %1746 = vmatpush.msra.mxu1 %v3462_v36  ;;  %v3472_v0 = vld [vmem:[#allocation5 + $0x28] sm:$0xff] }
 0x3a8   :  { %1786 = vmatpush.msra.mxu3 %v3466_v54  ;;  %1978 = vmatpush.msrb.mxu2 %v3286_v35  ;;  %v3721_v35 = vld [vmem:[#allocation13_spill] sm:$0xff] }
 0x3a9   :  { %1939 = vmatpush.msra.mxu0 %v3277_v1  ;;  %1747 = vmatpush.msra.mxu1 %v3472_v0  ;;  %v3482_v1 = vld [vmem:[#allocation5 + $0x8] sm:$0xff] }
 0x3aa   :  { %1787 = vmatpush.msra.mxu3 %v3476_v30  ;;  %1979 = vmatpush.msrb.mxu2 %v3294_v4 }
 0x3ab   :  { %1940 = vmatpush.msra.mxu0 %v3283_v7  ;;  %1748 = vmatpush.msra.mxu1 %v3482_v1 }
 0x3ac   :  { %1788 = vmatpush.msra.mxu3 %v3486_v44  ;;  %1980 = vmatpush.msrb.mxu2 %v3304_v14  ;;  %v3723_v14 = vld [vmem:[#allocation22_spill] sm:$0xff] }
 0x3ad   :  { %1941 = vmatpush.msra.mxu0 %v3298_v9  ;;  %1958 = vmatpush.msrb.mxu1 %v3281_v57 }
 0x3ae   :  { %1998 = vmatpush.msrb.mxu3 %v3288_v18  ;;  %1981 = vmatpush.msrb.mxu2 %v3319_v26 }
 0x3af   :  { %1942 = vmatpush.msra.mxu0 %v3315_v19  ;;  %1959 = vmatpush.msrb.mxu1 %v3292_v58  ;;  %v3722_v58 = vld [vmem:[#allocation20_spill] sm:$0xff] }
 0x3b0   :  { %1999 = vmatpush.msrb.mxu3 %v3296_v5  ;;  %1982 = vmatpush.msrb.mxu2 %v3334_v63 }
 0x3b1   :  { %1943 = vmatpush.msra.mxu0 %v3330_v15  ;;  %1960 = vmatpush.msrb.mxu1 %v3302_v13 }
 0x3b2   :  { %2000 = vmatpush.msrb.mxu3 %v3310_v33  ;;  %1983 = vmatpush.msrb.mxu2 %v3372_v40 }
 0x3b3   :  { %1944 = vmatpush.msra.mxu0 %v3341_v55  ;;  %1961 = vmatpush.msrb.mxu1 %v3312_v34 }
 0x3b4   :  { %2001 = vmatpush.msrb.mxu3 %v3325_v45  ;;  %1984 = vmatpush.msrb.mxu2 %v3384_v28 }
 0x3b5   :  { %1945 = vmatpush.msra.mxu0 %v3350_v41  ;;  %1962 = vmatpush.msrb.mxu1 %v3327_v49  ;;  %v3724_v41 = vld [vmem:[#allocation21_spill] sm:$0xff] }
 0x3b6   :  { %2002 = vmatpush.msrb.mxu3 %v3338_v8  ;;  %1985 = vmatpush.msrb.mxu2 %v3396_v12 }
 0x3b7   :  { %1946 = vmatpush.msra.mxu0 %v3357_v21  ;;  %1963 = vmatpush.msrb.mxu1 %v3370_v37 }
 0x3b8   :  { %2003 = vmatpush.msrb.mxu3 %v3376_v20  ;;  %1986 = vmatpush.msrb.mxu2 %v3408_v51 }
 0x3b9   :  { %1947 = vmatpush.msra.mxu0 %v3368_v31  ;;  %1964 = vmatpush.msrb.mxu1 %v3382_v27 }
 0x3ba   :  { %2004 = vmatpush.msrb.mxu3 %v3388_v59  ;;  %1987 = vmatpush.msrb.mxu2 %v3420_v38 }
 0x3bb   :  { %1948 = vmatpush.msra.mxu0 %v3380_v17  ;;  %1965 = vmatpush.msrb.mxu1 %v3394_v10 }
 0x3bc   :  { %2005 = vmatpush.msrb.mxu3 %v3400_v43  ;;  %1988 = vmatpush.msrb.mxu2 %v3432_v46 }
 0x3bd   :  { %1949 = vmatpush.msra.mxu0 %v3392_v2  ;;  %1966 = vmatpush.msrb.mxu1 %v3406_v11 }
 0x3be   :  { %2006 = vmatpush.msrb.mxu3 %v3412_v53  ;;  %1989 = vmatpush.msrb.mxu2 %v3444_v22 }
 0x3bf   :  { %1950 = vmatpush.msra.mxu0 %v3404_v16  ;;  %1967 = vmatpush.msrb.mxu1 %v3418_v47 }
 0x3c0   :  { %2007 = vmatpush.msrb.mxu3 %v3424_v56  ;;  %1990 = vmatpush.msrb.mxu2 %v3454_v61 }
 0x3c1   :  { %1951 = vmatpush.msra.mxu0 %v3416_v52  ;;  %1968 = vmatpush.msrb.mxu1 %v3430_v23 }
 0x3c2   :  { %2008 = vmatpush.msrb.mxu3 %v3436_v42  ;;  %1991 = vmatpush.msrb.mxu2 %v3464_v60 }
 0x3c3   :  { %1952 = vmatpush.msra.mxu0 %v3428_v3  ;;  %1969 = vmatpush.msrb.mxu1 %v3442_v32 }
 0x3c4   :  { %2009 = vmatpush.msrb.mxu3 %v3448_v50  ;;  %1992 = vmatpush.msrb.mxu2 %v3474_v24  ;;  %v2109_v24 = vld [vmem:[%s3615_s4 + $0x68] sm:$0xff] }
 0x3c5   :  { %1953 = vmatpush.msra.mxu0 %v3440_v25  ;;  %1970 = vmatpush.msrb.mxu1 %v3452_v29 }
 0x3c6   :  { %2010 = vmatpush.msrb.mxu3 %v3456_v62  ;;  %1993 = vmatpush.msrb.mxu2 %v3484_v39  ;;  %v2106_v39 = vld [vmem:[%s3615_s4 + $0x50] sm:$0xff] }
 0x3c7   :  { %1971 = vmatpush.msrb.mxu1 %v3462_v36 }
 0x3c8   :  { %2011 = vmatpush.msrb.mxu3 %v3466_v54 }
 0x3c9   :  { %1972 = vmatpush.msrb.mxu1 %v3472_v0  ;;  %v2111_v0 = vld [vmem:[%s3615_s4 + $0x78] sm:$0xff] }
 0x3ca   :  { %2012 = vmatpush.msrb.mxu3 %v3476_v30  ;;  %v2108_v30 = vld [vmem:[%s3615_s4 + $0x60] sm:$0xff] }
 0x3cb   :  { %1973 = vmatpush.msrb.mxu1 %v3482_v1  ;;  %v2107_v1 = vld [vmem:[%s3615_s4 + $0x58] sm:$0xff] }
 0x3cc   :  { %2013 = vmatpush.msrb.mxu3 %v3486_v44  ;;  %v2105_v44 = vld [vmem:[%s3615_s4 + $0x48] sm:$0xff] }
 0x422   :  { %v1505_v57 = vpop.f32.mrf.mxu0  ;;  %v1525_v7 = vpop.f32.mrf.mxu1 }
 0x423   :  { %v1568_v18 = vadd.f32 %v1505_v57, %v3721_v35  ;;  %v1569_v4 = vadd.f32 %v1525_v7, %v3722_v58  ;;  %v2104_v57 = vld [vmem:[%s3615_s4 + $0x40] sm:$0xff]  ;;  %v2103_v7 = vld [vmem:[%s3615_s4 + $0x38] sm:$0xff]  ;;  %v2102_v35 = vld [vmem:[%s3615_s4 + $0x30] sm:$0xff] }
 0x424   :  { %v2100_v58 = vld [vmem:[%s3615_s4 + $0x20] sm:$0xff] }
 0x425   :  { %v2202_v5 = vmul.f32 -1.442695, %v1568_v18  ;;  %v2203_v9 = vmul.f32 -1.442695, %v1569_v4  ;;  %v2101_v18 = vld [vmem:[%s3615_s4 + $0x28] sm:$0xff]  ;;  %v2099_v4 = vld [vmem:[%s3615_s4 + $0x18] sm:$0xff] }
 0x427   :  { %2303 = vpow2.f32 %v2202_v5  ;;  %v2098_v5 = vld [vmem:[%s3615_s4 + $0x10] sm:$0xff] }
 0x428   :  { %2305 = vpow2.f32 %v2203_v9  ;;  %v2097_v9 = vld [vmem:[%s3615_s4 + $0x8] sm:$0xff] }
 0x429   :  { %v1565_v13 = vpop.f32.mrf.mxu3  ;;  %v1545_v15 = vpop.f32.mrf.mxu2 }
 0x42a   :  { %v1571_v33 = vadd.f32 %v1565_v13, %v3723_v14  ;;  %v1570_v21 = vadd.f32 %v1545_v15, %v3724_v41  ;;  %v2096_v13 = vld [vmem:[%s3615_s4] sm:$0xff] }
 0x42c   :  { %v2204_v34 = vmul.f32 -1.442695, %v1571_v33 }
 0x42d   :  { %v2304_v19 = vpop.eup %2303 }
 0x42e   :  { %v2306_v26 = vpop.eup %2305  ;;  %v1575_v45 = vadd.f32 1.0, %v2304_v19  ;;  %2307 = vpow2.f32 %v2204_v34 }
 0x42f   :  { %v1594_v49 = vadd.f32 1.0, %v2306_v26 }
 0x430   :  { %2309 = vrcp.f32 %v1575_v45  ;;  %v1587_v17 = vand.u32 2147483648, %v1575_v45  ;;  %v1585_v59 = vand.u32 2147483647, %v1575_v45  ;;  %vm1581_vm15 = vweird.f32 %v1575_v45 }
 0x431   :  { %2311 = vrcp.f32 %v1594_v49  ;;  %v1606_v27 = vand.u32 2147483648, %v1594_v49  ;;  %v1604_v10 = vand.u32 2147483647, %v1594_v49  ;;  %vm1600_vm0 = vweird.f32 %v1594_v49 }
 0x432   :  { %v1588_v16 = vor.u32 1.1754944e-38, %v1587_v17  ;;  %vm1586_vm3 = vcmp.eq.f32.partialorder %v1585_v59, 8.507059e+37 }
 0x433   :  { %v1607_v53 = vor.u32 1.1754944e-38, %v1606_v27  ;;  %vm1605_vm4 = vcmp.eq.f32.partialorder %v1604_v10, 8.507059e+37 }
 0x434   :  { %v2308_v63 = vpop.eup %2307 }
 0x435   :  { %v1614_v8 = vadd.f32 1.0, %v2308_v63  ;;  %v2222_v63 = vld [vmem:[%s3616_s5] ss:$0 sm:$0xff] }
 0x436   :  { %v2310_v55 = vpop.eup %2309 }
 0x437   :  { %v2312_v48 = vpop.eup %2311  ;;  %v1577_v31 = vmul.f32 %v2310_v55, %v1575_v45  ;;  %2313 = vrcp.f32 %v1614_v8  ;;  %vm1582_vm13 = vweird.f32 %v2310_v55  ;;  %v1626_v50 = vand.u32 2147483648, %v1614_v8 }
 0x438   :  { %v1596_v37 = vmul.f32 %v2312_v48, %v1594_v49  ;;  %2315 = vtanh.f32 %v1570_v21  ;;  %vm1601_vm14 = vweird.f32 %v2312_v48  ;;  %vm1583_vm1 = vmor %vm1581_vm15, %vm1582_vm13  ;;  %vm1620_vm6 = vweird.f32 %v1614_v8 }
 0x439   :  { %v1578_v40 = vsub.f32 1.0, %v1577_v31  ;;  %vm1602_vm2 = vmor %vm1600_vm0, %vm1601_vm14  ;;  %v1624_v29 = vand.u32 2147483647, %v1614_v8  ;;  %v1627_v62 = vor.u32 1.1754944e-38, %v1626_v50 }
 0x43a   :  { %v1597_v20 = vsub.f32 1.0, %v1596_v37 }
 0x43b   :  { %v1579_v28 = vmul.f32 %v2310_v55, %v1578_v40  ;;  %vm1625_vm8 = vcmp.eq.f32.partialorder %v1624_v29, 8.507059e+37 }
 0x43c   :  { %v1598_v2 = vmul.f32 %v2312_v48, %v1597_v20 }
 0x43d   :  { %v2314_v12 = vpop.eup %2313  ;;  %v1580_v43 = vadd.f32 %v2310_v55, %v1579_v28 }
 0x43e   :  { %v1599_v11 = vadd.f32 %v2312_v48, %v1598_v2  ;;  %v1616_v51 = vmul.f32 %v2314_v12, %v1614_v8  ;;  %v2316_v47 = vpop.eup %2315  ;;  %vm1621_vm5 = vweird.f32 %v2314_v12 }
 0x43f   :  { %v1584_v52 = vsel %vm1583_vm1, %v2310_v55, %v1580_v43  ;;  %vm1622_vm7 = vmor %vm1620_vm6, %vm1621_vm5 }
 0x440   :  { %v1589_v38 = vsel %vm1586_vm3, %v1588_v16, %v1584_v52  ;;  %v1603_v56 = vsel %vm1602_vm2, %v2312_v48, %v1599_v11  ;;  %v1617_v3 = vsub.f32 1.0, %v1616_v51 }
 0x441   :  { %v1608_v23 = vsel %vm1605_vm4, %v1607_v53, %v1603_v56  ;;  %v1631_v46 = vmul.f32 %v2316_v47, %v1589_v38 }
 0x442   :  { %v1630_v42 = vmul.f32 %v1608_v23, %v3362_v6  ;;  %v1618_v25 = vmul.f32 %v2314_v12, %v1617_v3  ;;  %v2110_v6 = vld [vmem:[%s3615_s4 + $0x70] sm:$0xff]  ;;  %s2145_s4 = sshll.u32 %s3617_s6, 4  ;;  %s2146_s4 = int_to_ptr.hbm [resolvable:$true] %s2145_s4 }
 0x444   :  { %v1632_v32 = vadd.f32 %v1631_v46, %v1630_v42  ;;  %v1619_v22 = vadd.f32 %v2314_v12, %v1618_v25 }
 0x446   :  { %2317 = vtanh.f32 %v1632_v32  ;;  %v1623_v61 = vsel %vm1622_vm7, %v2314_v12, %v1619_v22 }
 0x447   :  { %v1628_v60 = vsel %vm1625_vm8, %v1627_v62, %v1623_v61 }
 0x44c   :  { %v2318_v36 = vpop.eup %2317 }
 0x44d   :  { %v1634_v54 = vmul.f32 %v2318_v36, %v1628_v60 }
 0x44f   :  { %1729 = vmatmul.f32.vlgmr.msrb.gmra.mxu0 %v1634_v54  ;;  %1749 = vmatmul.f32.vlgmr.msra.gmra.mxu1 %v1634_v54 }
 0x450   :  { %1769 = vmatmul.f32.vlgmr.msra.gmra.mxu2 %v1634_v54  ;;  %1789 = vmatmul.f32.vlgmr.msra.gmra.mxu3 %v1634_v54 }
 0x451   :  { %2116 = vmatpush.msrb.mxu0 %v2111_v0 }
 0x453   :  { %2117 = vmatpush.msrb.mxu0 %v2110_v6 }
 0x455   :  { %2118 = vmatpush.msrb.mxu0 %v2109_v24 }
 0x457   :  { %2119 = vmatpush.msrb.mxu0 %v2108_v30  ;;  %1974 = vmatmul.f32.vlgmr.msrb.gmra.mxu1 %v1634_v54 }
 0x458   :  { %1954 = vmatmul.f32.vlgmr.msra.gmra.mxu0 %v1634_v54  ;;  %1994 = vmatmul.f32.vlgmr.msrb.gmra.mxu2 %v1634_v54 }
 0x459   :  { %2014 = vmatmul.f32.vlgmr.msrb.gmra.mxu3 %v1634_v54  ;;  %2120 = vmatpush.msrb.mxu0 %v2107_v1 }
 0x45b   :  { %2121 = vmatpush.msrb.mxu0 %v2106_v39 }
 0x45d   :  { %2122 = vmatpush.msrb.mxu0 %v2105_v44 }
 0x45f   :  { %2123 = vmatpush.msrb.mxu0 %v2104_v57 }
 0x461   :  { %2124 = vmatpush.msrb.mxu0 %v2103_v7 }
 0x463   :  { %2125 = vmatpush.msrb.mxu0 %v2102_v35 }
 0x465   :  { %2126 = vmatpush.msrb.mxu0 %v2101_v18 }
 0x467   :  { %2127 = vmatpush.msrb.mxu0 %v2100_v58 }
 0x469   :  { %2128 = vmatpush.msrb.mxu0 %v2099_v4 }
 0x46b   :  { %2129 = vmatpush.msrb.mxu0 %v2098_v5 }
 0x46d   :  { %2130 = vmatpush.msrb.mxu0 %v2097_v9 }
 0x46f   :  { %2131 = vmatpush.msrb.mxu0 %v2096_v13 }
 0x470   :  { %2132 = vmatmul.f32.vlgmr.msrb.gmra.mxu0 %v1634_v54 }
 0x4cc   :  { %v1730_v14 = vpop.f32.mrf.mxu0  ;;  %v1750_v33 = vpop.f32.mrf.mxu1 }
 0x4d3   :  { %v1770_v34 = vpop.f32.mrf.mxu2  ;;  %v1790_v19 = vpop.f32.mrf.mxu3 }
 0x4d4   :  { %v1975_v26 = vpop.f32.mrf.mxu1 }
 0x4d5   :  { %v1955_v45 = vpop.f32.mrf.mxu0 }
 0x4db   :  { %v1995_v49 = vpop.f32.mrf.mxu2 }
 0x4dc   :  { %v2015_v15 = vpop.f32.mrf.mxu3 }
 0x4ed   :  { %v2133_v8 = vpop.f32.mrf.mxu0 }
 0x4ee   :  { %v2134_v55 = vadd.f32 %v2222_v63, %v2133_v8 }
 0x4f0   :  { %2137 = vst.msk [vmem:[#allocation8] sm:$0xff] %vm2136_vm9, %v2134_v55 }
 0x4f1   :  { %2148 = dma.vmem_to_hbm [thread:$0]  %s2144_s16, 128, %s2146_s4, [#allocation7]  }
 0x4f2   :  { %2369 = dma.done.wait [#allocation7], 128  }
 0x4f3   :  { %2370 = vsyncadd [#allocation7], 4294967168 }
 0x4f4   :  { %2153 = vsyncpa [#allocation6], 1 }
 0x4f5   :  { %2154 = vsyncpa [#allocation7], 1 }

</bundles_post_ra>
